<compile_context>
chip_gen: v6e
topology: v6e:2x2x1
jax: 0.10.0
libtpu: 0.0.40
codegen_flags: <defaults>
</compile_context>

<pallas_src>
import functools

import jax
import jax.numpy as jnp
from jax import lax
from jax.experimental import pallas as pl
from jax.experimental.pallas import tpu as pltpu


def _cdiv(a, b):
    return (a + b - 1) // b


def _round_up(a, b):
    return _cdiv(a, b) * b


def _vmem_limit_bytes():
    """Generation-aware VMEM budget (~75% of physical, clamped)."""
    try:
        cap = int(pltpu.get_tpu_info().vmem_capacity_bytes)
    except Exception:
        cap = 64 * 1024 * 1024
    return max(32 * 1024 * 1024, min(100 * 1024 * 1024, (cap * 3) // 4))


def _mxu_native_width():
    """Native MXU tile width: 256 on v6e/v7x, 128 otherwise."""
    try:
        kind = jax.devices()[0].device_kind.lower()
    except Exception:
        return 256
    return 256 if ("v6" in kind or "v7" in kind) else 128


# ----------------------------- Pallas kernels ------------------------------

def _matmul_bias_act_kernel(x_ref, w_ref, b_ref, o_ref, *, relu):
    """(rows, Cin) @ (Cin, Cout) on the MXU (bf16 in, f32 acc) + bias (+ReLU)."""
    y = jnp.dot(x_ref[...], w_ref[...], preferred_element_type=jnp.float32)
    y = y + b_ref[...]                       # f32 epilogue
    if relu:
        y = jnp.maximum(y, 0.0)
    o_ref[...] = y.astype(o_ref.dtype)


def _fused_out_proj_kernel(y2_ref, xs_ref, w3_ref, ws_ref, b_ref, o_ref):
    """relu(y2 @ (w3*s3) + xs @ (ws*ss) + (b3+bs)) -- projection shortcut.

    Two MXU dots feed one f32 accumulator; no concatenated LHS in HBM."""
    acc = jnp.dot(y2_ref[...], w3_ref[...], preferred_element_type=jnp.float32)
    acc = acc + jnp.dot(xs_ref[...], ws_ref[...],
                        preferred_element_type=jnp.float32)
    acc = acc + b_ref[...]
    o_ref[...] = jnp.maximum(acc, 0.0).astype(o_ref.dtype)


def _fused_out_id_kernel(y2_ref, xs_ref, w3_ref, b_ref, o_ref):
    """relu(y2 @ (w3*s3) + b3 + xs) -- identity shortcut."""
    acc = jnp.dot(y2_ref[...], w3_ref[...], preferred_element_type=jnp.float32)
    acc = acc + b_ref[...] + xs_ref[...].astype(jnp.float32)
    o_ref[...] = jnp.maximum(acc, 0.0).astype(o_ref.dtype)


def _gconv3x3_bias_relu_kernel(xph_ref, w_ref, b_ref, o_ref, *,
                               Ho, Wo, Wps, stride, chunk_rows):
    """Grouped 3x3 conv, stride folded in, channels-last, cropped store.

      xph_ref: (1, s*s, Hps*Wps, cb)  bf16   phase-split, zero-padded input
      w_ref:   (9, 1, cb, cb)         bf16   per-tap block-diagonal weights
      b_ref:   (1, cb)                f32
      o_ref:   (1, Ho, Wo, cb)               already cropped to Wo columns
    """
    s = stride
    cb = o_ref.shape[-1]
    bias = b_ref[...]
    r0 = 0
    while r0 < Ho:                                 # static row-chunk loop
        ch = min(chunk_rows, Ho - r0)
        L = ch * Wps
        base = r0 * Wps
        acc = jnp.zeros((L, cb), jnp.float32)
        for ki in range(3):                        # 9 taps, channel-count free
            for kj in range(3):
                phase = (ki % s) * s + (kj % s)
                start = base + (ki // s) * Wps + (kj // s)
                slab = xph_ref[0, phase, start:start + L, :]      # (L, cb)
                acc = acc + jnp.dot(slab, w_ref[ki * 3 + kj, 0],
                                    preferred_element_type=jnp.float32)
        y = jnp.maximum(acc + bias, 0.0).reshape(ch, Wps, cb)     # f32 epilogue
        o_ref[0, r0:r0 + ch, :, :] = y[:, :Wo, :].astype(o_ref.dtype)
        r0 += ch


# ----------------------------- pallas_call wrappers -------------------------

def _row_tile(M, cap):
    return cap if M >= cap else _round_up(max(M, 8), 8)


def matmul_bias_act(x2d, w, b, *, relu, out_dtype, tm_cap, vmem_limit):
    M, Cin = x2d.shape
    Cout = w.shape[1]
    tm = _row_tile(M, tm_cap)
    return pl.pallas_call(
        functools.partial(_matmul_bias_act_kernel, relu=relu),
        out_shape=jax.ShapeDtypeStruct((M, Cout), out_dtype),
        grid=(_cdiv(M, tm),),
        in_specs=[
            pl.BlockSpec((tm, Cin), lambda i: (i, 0)),
            pl.BlockSpec((Cin, Cout), lambda i: (0, 0)),
            pl.BlockSpec((1, Cout), lambda i: (0, 0)),
        ],
        out_specs=pl.BlockSpec((tm, Cout), lambda i: (i, 0)),
        compiler_params=pltpu.CompilerParams(
            dimension_semantics=("parallel",),
            vmem_limit_bytes=vmem_limit),
    )(x2d, w, b.reshape(1, Cout))


def fused_out_projection(y2, xs, w3, ws, b, *, out_dtype, tm_cap, vmem_limit):
    M, Cb = y2.shape
    Cin = xs.shape[1]
    Cout = w3.shape[1]
    tm = _row_tile(M, tm_cap)
    return pl.pallas_call(
        _fused_out_proj_kernel,
        out_shape=jax.ShapeDtypeStruct((M, Cout), out_dtype),
        grid=(_cdiv(M, tm),),
        in_specs=[
            pl.BlockSpec((tm, Cb), lambda i: (i, 0)),
            pl.BlockSpec((tm, Cin), lambda i: (i, 0)),
            pl.BlockSpec((Cb, Cout), lambda i: (0, 0)),
            pl.BlockSpec((Cin, Cout), lambda i: (0, 0)),
            pl.BlockSpec((1, Cout), lambda i: (0, 0)),
        ],
        out_specs=pl.BlockSpec((tm, Cout), lambda i: (i, 0)),
        compiler_params=pltpu.CompilerParams(
            dimension_semantics=("parallel",),
            vmem_limit_bytes=vmem_limit),
    )(y2, xs, w3, ws, b.reshape(1, Cout))


def fused_out_identity(y2, xs, w3, b, *, out_dtype, tm_cap, vmem_limit):
    M, Cb = y2.shape
    Cout = w3.shape[1]
    tm = _row_tile(M, tm_cap)
    return pl.pallas_call(
        _fused_out_id_kernel,
        out_shape=jax.ShapeDtypeStruct((M, Cout), out_dtype),
        grid=(_cdiv(M, tm),),
        in_specs=[
            pl.BlockSpec((tm, Cb), lambda i: (i, 0)),
            pl.BlockSpec((tm, Cout), lambda i: (i, 0)),
            pl.BlockSpec((Cb, Cout), lambda i: (0, 0)),
            pl.BlockSpec((1, Cout), lambda i: (0, 0)),
        ],
        out_specs=pl.BlockSpec((tm, Cout), lambda i: (i, 0)),
        compiler_params=pltpu.CompilerParams(
            dimension_semantics=("parallel",),
            vmem_limit_bytes=vmem_limit),
    )(y2, xs, w3, b.reshape(1, Cout))


def _pick_cb_block(Cb, gw, native):
    """Smallest legal channel block >= the MXU-native width.

    Block-diagonal matmul work scales linearly with cb, so prefer the smallest
    cb that (a) keeps whole groups, (b) divides Cb, and (c) is lane-legal
    (multiple of 128, or the full Cb)."""
    G = Cb // gw
    cands = []
    for k in range(1, G + 1):
        if G % k:
            continue
        cb = k * gw
        if cb % 128 == 0 or cb == Cb:
            cands.append(cb)
    for lo in (native, 128):
        ok = [c for c in cands if c >= lo]
        if ok:
            return min(ok)
    return Cb


def grouped_conv3x3_bias_relu(xph, w_bd, b, *, Ho, Wo, Wps, stride, cb,
                              out_dtype, vmem_limit):
    N, s2, Lp, Cb = xph.shape
    nblk = Cb // cb
    # Row chunking keeps the f32 accumulator ~<= 1024 rows regardless of H, W.
    chunk_rows = max(1, min(Ho, 1024 // max(Wps, 1)))
    kern = functools.partial(_gconv3x3_bias_relu_kernel, Ho=Ho, Wo=Wo, Wps=Wps,
                             stride=stride, chunk_rows=chunk_rows)
    return pl.pallas_call(
        kern,
        out_shape=jax.ShapeDtypeStruct((N, Ho, Wo, Cb), out_dtype),
        # Channel block is the SLOW axis: per-tap weights stay resident across
        # the inner batch steps (no weight re-DMA).
        grid=(nblk, N),
        in_specs=[
            pl.BlockSpec((1, s2, Lp, cb), lambda c, n: (n, 0, 0, c)),
            pl.BlockSpec((9, 1, cb, cb), lambda c, n: (0, c, 0, 0)),
            pl.BlockSpec((1, cb), lambda c, n: (0, c)),
        ],
        out_specs=pl.BlockSpec((1, Ho, Wo, cb), lambda c, n: (n, 0, 0, c)),
        compiler_params=pltpu.CompilerParams(
            dimension_semantics=("parallel", "parallel"),
            vmem_limit_bytes=vmem_limit),
    )(xph, w_bd, b.reshape(1, Cb))


# ----------------------------- host-side helpers ----------------------------

def _space_to_phases_flat(y_nhwc, s):
    """Zero-pad the 3x3 halo and split HxW into s*s unit-stride phases, then
    flatten the phase planes so every conv tap becomes one contiguous
    (rows, C) slab inside the kernel.  Wps is rounded up to a multiple of 8 so
    the ki-direction tap offsets are sublane-aligned; one extra all-zero phase
    row gives the shifted slabs slack at the bottom edge."""
    N, H, W, C = y_nhwc.shape
    Hp = s * _cdiv(H + 2, s) + s
    Wps = _round_up(_cdiv(W + 2, s), 8)
    Wp = s * Wps
    xpad = jnp.pad(y_nhwc, ((0, 0), (1, Hp - H - 1), (1, Wp - W - 1), (0, 0)))
    Hps = Hp // s
    xph = xpad.reshape(N, Hps, s, Wps, s, C).transpose(0, 2, 4, 1, 3, 5)
    return xph.reshape(N, s * s, Hps * Wps, C), Wps


def _fold_bn(gamma, beta, mean, var, eps=1e-5):
    scale = gamma / jnp.sqrt(var + eps)
    bias = beta - mean * scale
    return scale, bias


def init_xblock_params(key, in_channels, out_channels, bottleneck_ratio,
                       group_width, stride):
    Cb = in_channels // bottleneck_ratio
    G = Cb // group_width
    ks = jax.random.split(key, 8)

    def conv_init(k, shape, fan_in):
        return jax.random.normal(k, shape, jnp.float32) / jnp.sqrt(float(fan_in))

    def bn_init(k, c):
        k1, k2, k3, k4 = jax.random.split(k, 4)
        gamma = 1.0 + 0.1 * jax.random.normal(k1, (c,), jnp.float32)
        beta = 0.1 * jax.random.normal(k2, (c,), jnp.float32)
        mean = 0.1 * jax.random.normal(k3, (c,), jnp.float32)
        var = jnp.abs(1.0 + 0.1 * jax.random.normal(k4, (c,), jnp.float32))
        return _fold_bn(gamma, beta, mean, var)

    p = {}
    p["w1"] = conv_init(ks[0], (in_channels, Cb), in_channels)            # [ci, co]
    p["s1"], p["b1"] = bn_init(ks[1], Cb)
    p["w2"] = conv_init(ks[2], (3, 3, G, group_width, group_width),
                        9 * group_width)                                  # [ki,kj,g,ii,oi]
    p["s2"], p["b2"] = bn_init(ks[3], Cb)
    p["w3"] = conv_init(ks[4], (Cb, out_channels), Cb)                    # [ci, co]
    p["s3"], p["b3"] = bn_init(ks[5], out_channels)
    if stride != 1 or in_channels != out_channels:
        p["ws"] = conv_init(ks[6], (in_channels, out_channels), in_channels)
        p["ss"], p["bs"] = bn_init(ks[7], out_channels)
    return p, Cb, G


# ----------------------------- forward pass ---------------------------------

def xblock_forward_pallas(x_nchw, params, Cb, G, gw, stride):
    N, Cin, H, W = x_nchw.shape
    Cout = params["w3"].shape[1]
    Ho = (H - 1) // stride + 1
    Wo = (W - 1) // stride + 1

    vmem_limit = _vmem_limit_bytes()
    tm_cap = 1024 if vmem_limit >= 80 * 1024 * 1024 else 512
    cb = _pick_cb_block(Cb, gw, _mxu_native_width())
    nblk = Cb // cb
    gpb = cb // gw                                    # groups per channel block

    # Single layout change at the block boundary: NCHW -> channels-last.
    x_nhwc = jnp.transpose(x_nchw, (0, 2, 3, 1)).astype(jnp.bfloat16)

    # Fold BN scales into the conv weights in f32, then cast to bf16.
    w1 = (params["w1"] * params["s1"][None, :]).astype(jnp.bfloat16)
    # Compact per-channel-block block-diagonal conv2 weights: (9, nblk, cb, cb)
    # (never materialize the full (9, Cb, Cb) mostly-zero matrix).
    w2r = params["w2"].reshape(9, nblk, gpb, gw, gw)
    eye = jnp.eye(gpb, dtype=params["w2"].dtype)
    w_bd = (w2r[:, :, :, :, None, :] * eye[None, None, :, None, :, None])
    w_bd = w_bd.reshape(9, nblk, cb, cb)
    w_bd = (w_bd * params["s2"].reshape(nblk, cb)[None, :, None, :]
            ).astype(jnp.bfloat16)
    w3 = (params["w3"] * params["s3"][None, :]).astype(jnp.bfloat16)

    # conv_block_1: 1x1 conv + BN + ReLU == one MXU matmul over channels.
    y1_flat = matmul_bias_act(x_nhwc.reshape(-1, Cin), w1, params["b1"],
                              relu=True, out_dtype=jnp.bfloat16,
                              tm_cap=tm_cap, vmem_limit=vmem_limit)
    y1 = y1_flat.reshape(N, H, W, Cb)

    # conv_block_2: grouped 3x3 conv + BN + ReLU; stride folded via the
    # space-to-phase split; output comes back already cropped to Wo columns.
    # TODO(synk): the phase split is still one XLA pad+transpose pass over y1;
    # folding it into conv1's output needs strided/Element BlockSpec writes.
    xph, Wps = _space_to_phases_flat(y1, stride)
    y2 = grouped_conv3x3_bias_relu(xph, w_bd, params["b2"], Ho=Ho, Wo=Wo,
                                   Wps=Wps, stride=stride, cb=cb,
                                   out_dtype=jnp.bfloat16,
                                   vmem_limit=vmem_limit)
    y2_flat = y2.reshape(-1, Cb)

    # conv_block_3 (1x1 + BN) + shortcut + add + ReLU, fused in ONE kernel
    # (two MXU dots into one f32 accumulator -- no XLA concatenate).
    if "ws" in params:
        ws = (params["ws"] * params["ss"][None, :]).astype(jnp.bfloat16)
        # TODO(synk): the shortcut spatial subsample is still an XLA strided
        # slice; folding it into the kernel needs Element/strided BlockSpecs.
        xs_flat = x_nhwc[:, ::stride, ::stride, :].reshape(-1, Cin)
        b_fused = params["b3"] + params["bs"]
        out_flat = fused_out_projection(y2_flat, xs_flat, w3, ws, b_fused,
                                        out_dtype=jnp.bfloat16,
                                        tm_cap=tm_cap, vmem_limit=vmem_limit)
    else:
        xs_flat = x_nhwc.reshape(-1, Cin)
        out_flat = fused_out_identity(y2_flat, xs_flat, w3, params["b3"],
                                      out_dtype=jnp.bfloat16,
                                      tm_cap=tm_cap, vmem_limit=vmem_limit)

    out = out_flat.reshape(N, Ho, Wo, Cout)
    # Exit transpose reads bf16 (half the HBM bytes), widened to f32 on store.
    return jnp.transpose(out, (0, 3, 1, 2)).astype(jnp.float32)


# ----------------------------- pure-JAX reference ---------------------------

def xblock_forward_reference(x, params, Cb, G, gw, stride):
    dn = ("NCHW", "OIHW", "NCHW")
    Cin = x.shape[1]
    Cout = params["w3"].shape[1]

    def affine(y, s, b):
        return y * s[None, :, None, None] + b[None, :, None, None]

    w1 = jnp.transpose(params["w1"], (1, 0)).reshape(Cb, Cin, 1, 1)
    y1 = lax.conv_general_dilated(x, w1, (1, 1), "VALID", dimension_numbers=dn)
    y1 = jax.nn.relu(affine(y1, params["s1"], params["b1"]))

    w2 = jnp.transpose(params["w2"], (2, 4, 3, 0, 1)).reshape(Cb, gw, 3, 3)
    y2 = lax.conv_general_dilated(y1, w2, (stride, stride), [(1, 1), (1, 1)],
                                  dimension_numbers=dn, feature_group_count=G)
    y2 = jax.nn.relu(affine(y2, params["s2"], params["b2"]))

    w3 = jnp.transpose(params["w3"], (1, 0)).reshape(Cout, Cb, 1, 1)
    y3 = affine(lax.conv_general_dilated(y2, w3, (1, 1), "VALID",
                                         dimension_numbers=dn),
                params["s3"], params["b3"])

    if "ws" in params:
        ws = jnp.transpose(params["ws"], (1, 0)).reshape(Cout, Cin, 1, 1)
        sc = affine(lax.conv_general_dilated(x, ws, (stride, stride), "VALID",
                                             dimension_numbers=dn),
                    params["ss"], params["bs"])
    else:
        sc = x
    return jax.nn.relu(y3 + sc)


# ----------------------------- main -----------------------------------------

if __name__ == "__main__":
    key = jax.random.PRNGKey(0)

    configs = [
        # (N, Cin, H, W, Cout, bottleneck_ratio, group_width, stride)
        (2, 8, 16, 16, 16, 2, 2, 2),    # projection shortcut, stride 2
        (2, 16, 16, 16, 16, 2, 2, 1),   # identity shortcut, stride 1
    ]
    for (N, Cin, H, W, Cout, ratio, gw, stride) in configs:
        key, kx, kp = jax.random.split(key, 3)
        x = jax.random.normal(kx, (N, Cin, H, W), jnp.float32)   # NCHW input
        params, Cb, G = init_xblock_params(kp, Cin, Cout, ratio, gw, stride)

        fwd = jax.jit(functools.partial(xblock_forward_pallas, Cb=Cb, G=G,
                                        gw=gw, stride=stride))
        out = jax.block_until_ready(fwd(x, params))

        ref = xblock_forward_reference(x, params, Cb, G, gw, stride)
        Ho = (H - 1) // stride + 1
        Wo = (W - 1) // stride + 1
        assert out.shape == (N, Cout, Ho, Wo), out.shape

        # Matmuls + final store are bf16 with f32 accumulation, so allow
        # bf16-level mismatch against the pure-f32 reference.
        err = jnp.abs(out - ref)
        max_err = float(jnp.max(err))
        rms_err = float(jnp.sqrt(jnp.mean(err * err)))
        assert max_err < 2.0e-1, f"max_err={max_err}"
        assert rms_err < 4.0e-2, f"rms_err={rms_err}"

    print("KERNEL_OK")
</pallas_src>

<mosaic_0001>
module attributes {stable_mosaic.version = 11 : i64} {
  func.func @_matmul_bias_act_kernel(%arg0: i32, %arg1: memref<512x8xbf16, #tpu.memory_space<vmem>>, %arg2: memref<8x4xbf16, #tpu.memory_space<vmem>>, %arg3: memref<1x4xf32, #tpu.memory_space<vmem>>, %arg4: memref<512x4xbf16, #tpu.memory_space<vmem>>) attributes {dimension_semantics = [#tpu.dimension_semantics<parallel>], iteration_bounds = array<i64: 1>, scalar_prefetch = 0 : i64, scratch_operands = 0 : i64, tpu.core_type = #tpu.core_type<tc>, window_params = [{transform_indices = @transform_0, window_bounds = array<i64: 512, 8>}, {pipeline_mode = #tpu.pipeline_mode<synchronous>, transform_indices = @transform_1, window_bounds = array<i64: 8, 4>}, {pipeline_mode = #tpu.pipeline_mode<synchronous>, transform_indices = @transform_2, window_bounds = array<i64: 1, 4>}, {transform_indices = @transform_3, window_bounds = array<i64: 512, 4>}]} {
    %c0 = arith.constant 0 : index
    %c0_0 = arith.constant 0 : index
    %0 = vector.load %arg1[%c0, %c0_0] : memref<512x8xbf16, #tpu.memory_space<vmem>>, vector<512x8xbf16>
    %c0_1 = arith.constant 0 : index
    %c0_2 = arith.constant 0 : index
    %1 = vector.load %arg2[%c0_1, %c0_2] : memref<8x4xbf16, #tpu.memory_space<vmem>>, vector<8x4xbf16>
    %cst = arith.constant dense<0.000000e+00> : vector<512x4xf32>
    %2 = tpu.matmul %0, %1, %cst {dimension_numbers = #tpu.dot_dimension_numbers<[1], [0], [0], [1], [0, 0, 1, 1], [], []>} : vector<512x8xbf16>, vector<8x4xbf16>, vector<512x4xf32> -> vector<512x4xf32>
    %c0_3 = arith.constant 0 : index
    %c0_4 = arith.constant 0 : index
    %3 = vector.load %arg3[%c0_3, %c0_4] : memref<1x4xf32, #tpu.memory_space<vmem>>, vector<1x4xf32>
    %4 = vector.broadcast %3 : vector<1x4xf32> to vector<512x4xf32>
    %5 = arith.addf %2, %4 : vector<512x4xf32>
    %cst_5 = arith.constant 0.000000e+00 : f32
    %6 = vector.broadcast %cst_5 : f32 to vector<512x4xf32>
    %7 = arith.maximumf %5, %6 : vector<512x4xf32>
    %8 = arith.truncf %7 : vector<512x4xf32> to vector<512x4xbf16>
    %c0_6 = arith.constant 0 : index
    %c0_7 = arith.constant 0 : index
    %9 = vector.load %arg4[%c0_6, %c0_7] : memref<512x4xbf16, #tpu.memory_space<vmem>>, vector<512x4xbf16>
    tpu.vector_store %arg4[%c0_6, %c0_7], %8 {strides = array<i32>} : memref<512x4xbf16, #tpu.memory_space<vmem>>, vector<512x4xbf16>,
    return
  }
  func.func @transform_0(%arg0: i32) -> (i32, i32) {
    %c0_i32 = arith.constant 0 : i32
    %c0_i32_0 = arith.constant 0 : i32
    return %arg0, %c0_i32 : i32, i32
  }
  func.func @transform_1(%arg0: i32) -> (i32, i32) {
    %c0_i32 = arith.constant 0 : i32
    %c0_i32_0 = arith.constant 0 : i32
    %c0_i32_1 = arith.constant 0 : i32
    return %c0_i32, %c0_i32_0 : i32, i32
  }
  func.func @transform_2(%arg0: i32) -> (i32, i32) {
    %c0_i32 = arith.constant 0 : i32
    %c0_i32_0 = arith.constant 0 : i32
    %c0_i32_1 = arith.constant 0 : i32
    return %c0_i32, %c0_i32_0 : i32, i32
  }
  func.func @transform_3(%arg0: i32) -> (i32, i32) {
    %c0_i32 = arith.constant 0 : i32
    %c0_i32_0 = arith.constant 0 : i32
    return %arg0, %c0_i32 : i32, i32
  }
}

module attributes {stable_mosaic.version = 11 : i64} {
  func.func @_fused_out_proj_kernel(%arg0: i32, %arg1: memref<128x4xbf16, #tpu.memory_space<vmem>>, %arg2: memref<128x8xbf16, #tpu.memory_space<vmem>>, %arg3: memref<4x16xbf16, #tpu.memory_space<vmem>>, %arg4: memref<8x16xbf16, #tpu.memory_space<vmem>>, %arg5: memref<1x16xf32, #tpu.memory_space<vmem>>, %arg6: memref<128x16xbf16, #tpu.memory_space<vmem>>) attributes {dimension_semantics = [#tpu.dimension_semantics<parallel>], iteration_bounds = array<i64: 1>, scalar_prefetch = 0 : i64, scratch_operands = 0 : i64, tpu.core_type = #tpu.core_type<tc>, window_params = [{transform_indices = @transform_0, window_bounds = array<i64: 128, 4>}, {transform_indices = @transform_1, window_bounds = array<i64: 128, 8>}, {pipeline_mode = #tpu.pipeline_mode<synchronous>, transform_indices = @transform_2, window_bounds = array<i64: 4, 16>}, {pipeline_mode = #tpu.pipeline_mode<synchronous>, transform_indices = @transform_3, window_bounds = array<i64: 8, 16>}, {pipeline_mode = #tpu.pipeline_mode<synchronous>, transform_indices = @transform_4, window_bounds = array<i64: 1, 16>}, {transform_indices = @transform_5, window_bounds = array<i64: 128, 16>}]} {
    %c0 = arith.constant 0 : index
    %c0_0 = arith.constant 0 : index
    %0 = vector.load %arg1[%c0, %c0_0] : memref<128x4xbf16, #tpu.memory_space<vmem>>, vector<128x4xbf16>
    %c0_1 = arith.constant 0 : index
    %c0_2 = arith.constant 0 : index
    %1 = vector.load %arg3[%c0_1, %c0_2] : memref<4x16xbf16, #tpu.memory_space<vmem>>, vector<4x16xbf16>
    %cst = arith.constant dense<0.000000e+00> : vector<128x16xf32>
    %2 = tpu.matmul %0, %1, %cst {dimension_numbers = #tpu.dot_dimension_numbers<[1], [0], [0], [1], [0, 0, 1, 1], [], []>} : vector<128x4xbf16>, vector<4x16xbf16>, vector<128x16xf32> -> vector<128x16xf32>
    %c0_3 = arith.constant 0 : index
    %c0_4 = arith.constant 0 : index
    %3 = vector.load %arg2[%c0_3, %c0_4] : memref<128x8xbf16, #tpu.memory_space<vmem>>, vector<128x8xbf16>
    %c0_5 = arith.constant 0 : index
    %c0_6 = arith.constant 0 : index
    %4 = vector.load %arg4[%c0_5, %c0_6] : memref<8x16xbf16, #tpu.memory_space<vmem>>, vector<8x16xbf16>
    %cst_7 = arith.constant dense<0.000000e+00> : vector<128x16xf32>
    %5 = tpu.matmul %3, %4, %cst_7 {dimension_numbers = #tpu.dot_dimension_numbers<[1], [0], [0], [1], [0, 0, 1, 1], [], []>} : vector<128x8xbf16>, vector<8x16xbf16>, vector<128x16xf32> -> vector<128x16xf32>
    %6 = arith.addf %2, %5 : vector<128x16xf32>
    %c0_8 = arith.constant 0 : index
    %c0_9 = arith.constant 0 : index
    %7 = vector.load %arg5[%c0_8, %c0_9] : memref<1x16xf32, #tpu.memory_space<vmem>>, vector<1x16xf32>
    %8 = vector.broadcast %7 : vector<1x16xf32> to vector<128x16xf32>
    %9 = arith.addf %6, %8 : vector<128x16xf32>
    %cst_10 = arith.constant 0.000000e+00 : f32
    %10 = vector.broadcast %cst_10 : f32 to vector<128x16xf32>
    %11 = arith.maximumf %9, %10 : vector<128x16xf32>
    %12 = arith.truncf %11 : vector<128x16xf32> to vector<128x16xbf16>
    %c0_11 = arith.constant 0 : index
    %c0_12 = arith.constant 0 : index
    %13 = vector.load %arg6[%c0_11, %c0_12] : memref<128x16xbf16, #tpu.memory_space<vmem>>, vector<128x16xbf16>
    tpu.vector_store %arg6[%c0_11, %c0_12], %12 {strides = array<i32>} : memref<128x16xbf16, #tpu.memory_space<vmem>>, vector<128x16xbf16>,
    return
  }
  func.func @transform_0(%arg0: i32) -> (i32, i32) {
    %c0_i32 = arith.constant 0 : i32
    %c0_i32_0 = arith.constant 0 : i32
    return %arg0, %c0_i32 : i32, i32
  }
  func.func @transform_1(%arg0: i32) -> (i32, i32) {
    %c0_i32 = arith.constant 0 : i32
    %c0_i32_0 = arith.constant 0 : i32
    return %arg0, %c0_i32 : i32, i32
  }
  func.func @transform_2(%arg0: i32) -> (i32, i32) {
    %c0_i32 = arith.constant 0 : i32
    %c0_i32_0 = arith.constant 0 : i32
    %c0_i32_1 = arith.constant 0 : i32
    return %c0_i32, %c0_i32_0 : i32, i32
  }
  func.func @transform_3(%arg0: i32) -> (i32, i32) {
    %c0_i32 = arith.constant 0 : i32
    %c0_i32_0 = arith.constant 0 : i32
    %c0_i32_1 = arith.constant 0 : i32
    return %c0_i32, %c0_i32_0 : i32, i32
  }
  func.func @transform_4(%arg0: i32) -> (i32, i32) {
    %c0_i32 = arith.constant 0 : i32
    %c0_i32_0 = arith.constant 0 : i32
    %c0_i32_1 = arith.constant 0 : i32
    return %c0_i32, %c0_i32_0 : i32, i32
  }
  func.func @transform_5(%arg0: i32) -> (i32, i32) {
    %c0_i32 = arith.constant 0 : i32
    %c0_i32_0 = arith.constant 0 : i32
    return %arg0, %c0_i32 : i32, i32
  }
}

module attributes {stable_mosaic.version = 11 : i64} {
  func.func @_gconv3x3_bias_relu_kernel(%arg0: i32, %arg1: i32, %arg2: memref<1x4x160x4xbf16, #tpu.memory_space<vmem>>, %arg3: memref<9x1x4x4xbf16, #tpu.memory_space<vmem>>, %arg4: memref<1x4xf32, #tpu.memory_space<vmem>>, %arg5: memref<1x8x8x4xbf16, #tpu.memory_space<vmem>>) attributes {dimension_semantics = [#tpu.dimension_semantics<parallel>, #tpu.dimension_semantics<parallel>], iteration_bounds = array<i64: 1, 2>, scalar_prefetch = 0 : i64, scratch_operands = 0 : i64, tpu.core_type = #tpu.core_type<tc>, window_params = [{transform_indices = @transform_0, window_bounds = array<i64: 1, 4, 160, 4>}, {transform_indices = @transform_1, window_bounds = array<i64: 9, 1, 4, 4>}, {transform_indices = @transform_2, window_bounds = array<i64: 1, 4>}, {transform_indices = @transform_3, window_bounds = array<i64: 1, 8, 8, 4>}]} {
    %c0 = arith.constant 0 : index
    %c0_0 = arith.constant 0 : index
    %0 = vector.load %arg4[%c0, %c0_0] : memref<1x4xf32, #tpu.memory_space<vmem>>, vector<1x4xf32>
    %cst = arith.constant 0.000000e+00 : f32
    %1 = vector.broadcast %cst : f32 to vector<128x4xf32>
    %c0_1 = arith.constant 0 : index
    %c0_2 = arith.constant 0 : index
    %c0_3 = arith.constant 0 : index
    %c0_4 = arith.constant 0 : index
    %2 = vector.load %arg2[%c0_1, %c0_2, %c0_3, %c0_4] : memref<1x4x160x4xbf16, #tpu.memory_space<vmem>>, vector<1x1x128x4xbf16>
    %3 = vector.shape_cast %2 : vector<1x1x128x4xbf16> to vector<128x4xbf16>
    %c0_5 = arith.constant 0 : index
    %c0_6 = arith.constant 0 : index
    %c0_7 = arith.constant 0 : index
    %c0_8 = arith.constant 0 : index
    %4 = vector.load %arg3[%c0_5, %c0_6, %c0_7, %c0_8] : memref<9x1x4x4xbf16, #tpu.memory_space<vmem>>, vector<1x1x4x4xbf16>
    %5 = vector.shape_cast %4 : vector<1x1x4x4xbf16> to vector<4x4xbf16>
    %cst_9 = arith.constant dense<0.000000e+00> : vector<128x4xf32>
    %6 = tpu.matmul %3, %5, %cst_9 {dimension_numbers = #tpu.dot_dimension_numbers<[1], [0], [0], [1], [0, 0, 1, 1], [], []>} : vector<128x4xbf16>, vector<4x4xbf16>, vector<128x4xf32> -> vector<128x4xf32>
    %7 = arith.addf %1, %6 : vector<128x4xf32>
    %c0_10 = arith.constant 0 : index
    %c1 = arith.constant 1 : index
    %c0_11 = arith.constant 0 : index
    %c0_12 = arith.constant 0 : index
    %8 = vector.load %arg2[%c0_10, %c1, %c0_11, %c0_12] : memref<1x4x160x4xbf16, #tpu.memory_space<vmem>>, vector<1x1x128x4xbf16>
    %9 = vector.shape_cast %8 : vector<1x1x128x4xbf16> to vector<128x4xbf16>
    %c1_13 = arith.constant 1 : index
    %c0_14 = arith.constant 0 : index
    %c0_15 = arith.constant 0 : index
    %c0_16 = arith.constant 0 : index
    %10 = vector.load %arg3[%c1_13, %c0_14, %c0_15, %c0_16] : memref<9x1x4x4xbf16, #tpu.memory_space<vmem>>, vector<1x1x4x4xbf16>
    %11 = vector.shape_cast %10 : vector<1x1x4x4xbf16> to vector<4x4xbf16>
    %cst_17 = arith.constant dense<0.000000e+00> : vector<128x4xf32>
    %12 = tpu.matmul %9, %11, %cst_17 {dimension_numbers = #tpu.dot_dimension_numbers<[1], [0], [0], [1], [0, 0, 1, 1], [], []>} : vector<128x4xbf16>, vector<4x4xbf16>, vector<128x4xf32> -> vector<128x4xf32>
    %13 = arith.addf %7, %12 : vector<128x4xf32>
    %c0_18 = arith.constant 0 : index
    %c0_19 = arith.constant 0 : index
    %c1_20 = arith.constant 1 : index
    %c0_21 = arith.constant 0 : index
    %14 = vector.load %arg2[%c0_18, %c0_19, %c1_20, %c0_21] : memref<1x4x160x4xbf16, #tpu.memory_space<vmem>>, vector<1x1x128x4xbf16>
    %15 = vector.shape_cast %14 : vector<1x1x128x4xbf16> to vector<128x4xbf16>
    %c2 = arith.constant 2 : index
    %c0_22 = arith.constant 0 : index
    %c0_23 = arith.constant 0 : index
    %c0_24 = arith.constant 0 : index
    %16 = vector.load %arg3[%c2, %c0_22, %c0_23, %c0_24] : memref<9x1x4x4xbf16, #tpu.memory_space<vmem>>, vector<1x1x4x4xbf16>
    %17 = vector.shape_cast %16 : vector<1x1x4x4xbf16> to vector<4x4xbf16>
    %cst_25 = arith.constant dense<0.000000e+00> : vector<128x4xf32>
    %18 = tpu.matmul %15, %17, %cst_25 {dimension_numbers = #tpu.dot_dimension_numbers<[1], [0], [0], [1], [0, 0, 1, 1], [], []>} : vector<128x4xbf16>, vector<4x4xbf16>, vector<128x4xf32> -> vector<128x4xf32>
    %19 = arith.addf %13, %18 : vector<128x4xf32>
    %c0_26 = arith.constant 0 : index
    %c2_27 = arith.constant 2 : index
    %c0_28 = arith.constant 0 : index
    %c0_29 = arith.constant 0 : index
    %20 = vector.load %arg2[%c0_26, %c2_27, %c0_28, %c0_29] : memref<1x4x160x4xbf16, #tpu.memory_space<vmem>>, vector<1x1x128x4xbf16>
    %21 = vector.shape_cast %20 : vector<1x1x128x4xbf16> to vector<128x4xbf16>
    %c3 = arith.constant 3 : index
    %c0_30 = arith.constant 0 : index
    %c0_31 = arith.constant 0 : index
    %c0_32 = arith.constant 0 : index
    %22 = vector.load %arg3[%c3, %c0_30, %c0_31, %c0_32] : memref<9x1x4x4xbf16, #tpu.memory_space<vmem>>, vector<1x1x4x4xbf16>
    %23 = vector.shape_cast %22 : vector<1x1x4x4xbf16> to vector<4x4xbf16>
    %cst_33 = arith.constant dense<0.000000e+00> : vector<128x4xf32>
    %24 = tpu.matmul %21, %23, %cst_33 {dimension_numbers = #tpu.dot_dimension_numbers<[1], [0], [0], [1], [0, 0, 1, 1], [], []>} : vector<128x4xbf16>, vector<4x4xbf16>, vector<128x4xf32> -> vector<128x4xf32>
    %25 = arith.addf %19, %24 : vector<128x4xf32>
    %c0_34 = arith.constant 0 : index
    %c3_35 = arith.constant 3 : index
    %c0_36 = arith.constant 0 : index
    %c0_37 = arith.constant 0 : index
    %26 = vector.load %arg2[%c0_34, %c3_35, %c0_36, %c0_37] : memref<1x4x160x4xbf16, #tpu.memory_space<vmem>>, vector<1x1x128x4xbf16>
    %27 = vector.shape_cast %26 : vector<1x1x128x4xbf16> to vector<128x4xbf16>
    %c4 = arith.constant 4 : index
    %c0_38 = arith.constant 0 : index
    %c0_39 = arith.constant 0 : index
    %c0_40 = arith.constant 0 : index
    %28 = vector.load %arg3[%c4, %c0_38, %c0_39, %c0_40] : memref<9x1x4x4xbf16, #tpu.memory_space<vmem>>, vector<1x1x4x4xbf16>
    %29 = vector.shape_cast %28 : vector<1x1x4x4xbf16> to vector<4x4xbf16>
    %cst_41 = arith.constant dense<0.000000e+00> : vector<128x4xf32>
    %30 = tpu.matmul %27, %29, %cst_41 {dimension_numbers = #tpu.dot_dimension_numbers<[1], [0], [0], [1], [0, 0, 1, 1], [], []>} : vector<128x4xbf16>, vector<4x4xbf16>, vector<128x4xf32> -> vector<128x4xf32>
    %31 = arith.addf %25, %30 : vector<128x4xf32>
    %c0_42 = arith.constant 0 : index
    %c2_43 = arith.constant 2 : index
    %c1_44 = arith.constant 1 : index
    %c0_45 = arith.constant 0 : index
    %32 = vector.load %arg2[%c0_42, %c2_43, %c1_44, %c0_45] : memref<1x4x160x4xbf16, #tpu.memory_space<vmem>>, vector<1x1x128x4xbf16>
    %33 = vector.shape_cast %32 : vector<1x1x128x4xbf16> to vector<128x4xbf16>
    %c5 = arith.constant 5 : index
    %c0_46 = arith.constant 0 : index
    %c0_47 = arith.constant 0 : index
    %c0_48 = arith.constant 0 : index
    %34 = vector.load %arg3[%c5, %c0_46, %c0_47, %c0_48] : memref<9x1x4x4xbf16, #tpu.memory_space<vmem>>, vector<1x1x4x4xbf16>
    %35 = vector.shape_cast %34 : vector<1x1x4x4xbf16> to vector<4x4xbf16>
    %cst_49 = arith.constant dense<0.000000e+00> : vector<128x4xf32>
    %36 = tpu.matmul %33, %35, %cst_49 {dimension_numbers = #tpu.dot_dimension_numbers<[1], [0], [0], [1], [0, 0, 1, 1], [], []>} : vector<128x4xbf16>, vector<4x4xbf16>, vector<128x4xf32> -> vector<128x4xf32>
    %37 = arith.addf %31, %36 : vector<128x4xf32>
    %c0_50 = arith.constant 0 : index
    %c0_51 = arith.constant 0 : index
    %c16 = arith.constant 16 : index
    %c0_52 = arith.constant 0 : index
    %38 = vector.load %arg2[%c0_50, %c0_51, %c16, %c0_52] : memref<1x4x160x4xbf16, #tpu.memory_space<vmem>>, vector<1x1x128x4xbf16>
    %39 = vector.shape_cast %38 : vector<1x1x128x4xbf16> to vector<128x4xbf16>
    %c6 = arith.constant 6 : index
    %c0_53 = arith.constant 0 : index
    %c0_54 = arith.constant 0 : index
    %c0_55 = arith.constant 0 : index
    %40 = vector.load %arg3[%c6, %c0_53, %c0_54, %c0_55] : memref<9x1x4x4xbf16, #tpu.memory_space<vmem>>, vector<1x1x4x4xbf16>
    %41 = vector.shape_cast %40 : vector<1x1x4x4xbf16> to vector<4x4xbf16>
    %cst_56 = arith.constant dense<0.000000e+00> : vector<128x4xf32>
    %42 = tpu.matmul %39, %41, %cst_56 {dimension_numbers = #tpu.dot_dimension_numbers<[1], [0], [0], [1], [0, 0, 1, 1], [], []>} : vector<128x4xbf16>, vector<4x4xbf16>, vector<128x4xf32> -> vector<128x4xf32>
    %43 = arith.addf %37, %42 : vector<128x4xf32>
    %c0_57 = arith.constant 0 : index
    %c1_58 = arith.constant 1 : index
    %c16_59 = arith.constant 16 : index
    %c0_60 = arith.constant 0 : index
    %44 = vector.load %arg2[%c0_57, %c1_58, %c16_59, %c0_60] : memref<1x4x160x4xbf16, #tpu.memory_space<vmem>>, vector<1x1x128x4xbf16>
    %45 = vector.shape_cast %44 : vector<1x1x128x4xbf16> to vector<128x4xbf16>
    %c7 = arith.constant 7 : index
    %c0_61 = arith.constant 0 : index
    %c0_62 = arith.constant 0 : index
    %c0_63 = arith.constant 0 : index
    %46 = vector.load %arg3[%c7, %c0_61, %c0_62, %c0_63] : memref<9x1x4x4xbf16, #tpu.memory_space<vmem>>, vector<1x1x4x4xbf16>
    %47 = vector.shape_cast %46 : vector<1x1x4x4xbf16> to vector<4x4xbf16>
    %cst_64 = arith.constant dense<0.000000e+00> : vector<128x4xf32>
    %48 = tpu.matmul %45, %47, %cst_64 {dimension_numbers = #tpu.dot_dimension_numbers<[1], [0], [0], [1], [0, 0, 1, 1], [], []>} : vector<128x4xbf16>, vector<4x4xbf16>, vector<128x4xf32> -> vector<128x4xf32>
    %49 = arith.addf %43, %48 : vector<128x4xf32>
    %c0_65 = arith.constant 0 : index
    %c0_66 = arith.constant 0 : index
    %c17 = arith.constant 17 : index
    %c0_67 = arith.constant 0 : index
    %50 = vector.load %arg2[%c0_65, %c0_66, %c17, %c0_67] : memref<1x4x160x4xbf16, #tpu.memory_space<vmem>>, vector<1x1x128x4xbf16>
    %51 = vector.shape_cast %50 : vector<1x1x128x4xbf16> to vector<128x4xbf16>
    %c8 = arith.constant 8 : index
    %c0_68 = arith.constant 0 : index
    %c0_69 = arith.constant 0 : index
    %c0_70 = arith.constant 0 : index
    %52 = vector.load %arg3[%c8, %c0_68, %c0_69, %c0_70] : memref<9x1x4x4xbf16, #tpu.memory_space<vmem>>, vector<1x1x4x4xbf16>
    %53 = vector.shape_cast %52 : vector<1x1x4x4xbf16> to vector<4x4xbf16>
    %cst_71 = arith.constant dense<0.000000e+00> : vector<128x4xf32>
    %54 = tpu.matmul %51, %53, %cst_71 {dimension_numbers = #tpu.dot_dimension_numbers<[1], [0], [0], [1], [0, 0, 1, 1], [], []>} : vector<128x4xbf16>, vector<4x4xbf16>, vector<128x4xf32> -> vector<128x4xf32>
    %55 = arith.addf %49, %54 : vector<128x4xf32>
    %56 = vector.broadcast %0 : vector<1x4xf32> to vector<128x4xf32>
    %57 = arith.addf %55, %56 : vector<128x4xf32>
    %cst_72 = arith.constant 0.000000e+00 : f32
    %58 = vector.broadcast %cst_72 : f32 to vector<128x4xf32>
    %59 = arith.maximumf %57, %58 : vector<128x4xf32>
    %60 = vector.shape_cast %59 : vector<128x4xf32> to vector<8x16x4xf32>
    %61 = vector.extract_strided_slice %60 {offsets = [0, 0, 0], sizes = [8, 8, 4], strides = [1, 1, 1]} : vector<8x16x4xf32> to vector<8x8x4xf32>
    %62 = arith.truncf %61 : vector<8x8x4xf32> to vector<8x8x4xbf16>
    %c0_73 = arith.constant 0 : index
    %c0_74 = arith.constant 0 : index
    %c0_75 = arith.constant 0 : index
    %c0_76 = arith.constant 0 : index
    %63 = vector.load %arg5[%c0_73, %c0_74, %c0_75, %c0_76] : memref<1x8x8x4xbf16, #tpu.memory_space<vmem>>, vector<1x8x8x4xbf16>
    %64 = vector.shape_cast %63 : vector<1x8x8x4xbf16> to vector<8x8x4xbf16>
    %65 = vector.shape_cast %62 : vector<8x8x4xbf16> to vector<1x8x8x4xbf16>
    tpu.vector_store %arg5[%c0_73, %c0_74, %c0_75, %c0_76], %65 {strides = array<i32>} : memref<1x8x8x4xbf16, #tpu.memory_space<vmem>>, vector<1x8x8x4xbf16>,
    return
  }
  func.func @transform_0(%arg0: i32, %arg1: i32) -> (i32, i32, i32, i32) {
    %c0_i32 = arith.constant 0 : i32
    %c0_i32_0 = arith.constant 0 : i32
    %c0_i32_1 = arith.constant 0 : i32
    return %arg1, %c0_i32, %c0_i32_0, %arg0 : i32, i32, i32, i32
  }
  func.func @transform_1(%arg0: i32, %arg1: i32) -> (i32, i32, i32, i32) {
    %c0_i32 = arith.constant 0 : i32
    %c0_i32_0 = arith.constant 0 : i32
    %c0_i32_1 = arith.constant 0 : i32
    %c0_i32_2 = arith.constant 0 : i32
    return %c0_i32, %arg0, %c0_i32_0, %c0_i32_1 : i32, i32, i32, i32
  }
  func.func @transform_2(%arg0: i32, %arg1: i32) -> (i32, i32) {
    %c0_i32 = arith.constant 0 : i32
    %c0_i32_0 = arith.constant 0 : i32
    return %c0_i32, %arg0 : i32, i32
  }
  func.func @transform_3(%arg0: i32, %arg1: i32) -> (i32, i32, i32, i32) {
    %c0_i32 = arith.constant 0 : i32
    %c0_i32_0 = arith.constant 0 : i32
    %c0_i32_1 = arith.constant 0 : i32
    return %arg1, %c0_i32, %c0_i32_0, %arg0 : i32, i32, i32, i32
  }
}

</mosaic_0001>

<bundles_post_ra>
// kernel: xblock_forward_pallas.5
= control target key start
LH: loop header
LB: loop body
LE: loop exit
PB: predicated region body
PF: predicated region fallthrough
CT: control target
= control target key end

     0   :  { %vm120_vm0 = vcmask 1043456   ;;  %vm286_vm1 = vcmask 1041408   ;;  %vm95_vm2 = vcmask 64512   ;;  %vm261_vm3 = vcmask 31744   ;;  %s833_s3 = inlined_call_operand.vmem [shape: bf16[8,16], index: 3, kind: input, shape index: {}]   ;;  %s834_s2 = inlined_call_operand.vmem [shape: bf16[4,16], index: 2, kind: input, shape index: {}]   ;;  %s835_s1 = inlined_call_operand.vmem [shape: bf16[128,8], index: 1, kind: input, shape index: {}]   ;;  %s836_s0 = inlined_call_operand.vmem [shape: bf16[128,4], index: 0, kind: input, shape index: {}]   ;;  %s837_s4 = inlined_call_operand.vmem [shape: f32[1,16], index: 4, kind: input, shape index: {}]   ;;  %s838_s5 = inlined_call_operand.vmem [shape: bf16[128,16], index: 5, kind: output, shape index: {}]  }
   0x1   :  { %v54_v0 = vld [vmem:[%s833_s3] sm:$0xf]  ;;  %v634_v6 = vld [vmem:[%s835_s1 + $0x8] sm:$0xff]   ;;  %v636_v8 = vld [vmem:[%s835_s1 + $0x10] sm:$0xff]   ;;  %vm490_vm4 = vcmask 125952  }
   0x2   :  { %v37_v1 = vld [vmem:[%s834_s2] sm:$0x3]  ;;  %630 = vmatprep.subr.msk.bf16.mxu0 %vm120_vm0, %v54_v0  ;;  %v122_v2 = vsel %vm120_vm0, %v54_v0, 0  ;;  %v635_v7 = vld [vmem:[%s836_s0 + $0x8] sm:$0xff]   ;;  %v637_v9 = vld [vmem:[%s836_s0 + $0x10] sm:$0xff]  }
   0x3   :  { %631 = vmatprep.subr.msk.bf16.mxu1 %vm286_vm1, %v37_v1  ;;  %v288_v3 = vsel %vm286_vm1, %v37_v1, 0  ;;  %v632_v4 = vld [vmem:[%s835_s1] sm:$0xff]   ;;  %595 = vmatpush3.bf16.msra.mxu0 %v122_v2  ;;  %v638_v10 = vld [vmem:[%s835_s1 + $0x18] sm:$0xff]   ;;  %v642_v14 = vld [vmem:[%s835_s1 + $0x28] sm:$0xff]  }
   0x4   :  { %v633_v5 = vld [vmem:[%s836_s0] sm:$0xff]   ;;  %613 = vmatpush3.bf16.msra.mxu1 %v288_v3  ;;  %596 = vmatprep.mubr.msk.bf16.mxu0 %vm95_vm2, %v632_v4  ;;  %v639_v11 = vld [vmem:[%s836_s0 + $0x18] sm:$0xff]   ;;  %v643_v15 = vld [vmem:[%s836_s0 + $0x28] sm:$0xff]  }
   0x5   :  { %614 = vmatprep.mubr.msk.bf16.mxu1 %vm261_vm3, %v633_v5  ;;  %v640_v12 = vld [vmem:[%s835_s1 + $0x20] sm:$0xff]   ;;  %v644_v16 = vld [vmem:[%s835_s1 + $0x30] sm:$0xff]   ;;  %v646_v18 = vld [vmem:[%s835_s1 + $0x38] sm:$0xff]  }
   0x6   :  { %597 = vmatmul.mubr.msk.bf16.vlgmr.msra.gmra.mxu0 %vm95_vm2, %v634_v6  ;;  %v641_v13 = vld [vmem:[%s836_s0 + $0x20] sm:$0xff]   ;;  %v645_v17 = vld [vmem:[%s836_s0 + $0x30] sm:$0xff]   ;;  %v647_v19 = vld [vmem:[%s836_s0 + $0x38] sm:$0xff]  }
   0x7   :  { %615 = vmatmul.mubr.msk.bf16.vlgmr.msra.gmra.mxu1 %vm261_vm3, %v635_v7  ;;  %600 = vmatprep.mubr.msk.bf16.mxu0 %vm95_vm2, %v636_v8  ;;  %v751_v22 = vld [vmem:[%s837_s4] ss:$0 sm:$0xff] }
   0x8   :  { %618 = vmatprep.mubr.msk.bf16.mxu1 %vm261_vm3, %v637_v9 }
   0xe   :  { %601 = vmatmul.mubr.msk.bf16.gmra.mxu0 %vm95_vm2, %v638_v10 }
   0xf   :  { %619 = vmatmul.mubr.msk.bf16.gmra.mxu1 %vm261_vm3, %v639_v11  ;;  %604 = vmatprep.mubr.msk.bf16.mxu0 %vm95_vm2, %v640_v12 }
  0x10   :  { %622 = vmatprep.mubr.msk.bf16.mxu1 %vm261_vm3, %v641_v13 }
  0x16   :  { %605 = vmatmul.mubr.msk.bf16.gmra.mxu0 %vm95_vm2, %v642_v14 }
  0x17   :  { %623 = vmatmul.mubr.msk.bf16.gmra.mxu1 %vm261_vm3, %v643_v15  ;;  %608 = vmatprep.mubr.msk.bf16.mxu0 %vm95_vm2, %v644_v16 }
  0x18   :  { %626 = vmatprep.mubr.msk.bf16.mxu1 %vm261_vm3, %v645_v17 }
  0x1e   :  { %609 = vmatmul.mubr.msk.bf16.gmra.mxu0 %vm95_vm2, %v646_v18 }
  0x1f   :  { %627 = vmatmul.mubr.msk.bf16.gmra.mxu1 %vm261_vm3, %v647_v19 }
  0xc6   :  { %v598_v20 = vpop.f32.mrf.mxu0 }
  0xc7   :  { %v616_v21 = vpop.f32.mrf.mxu1 }
  0xc8   :  { %v333_v23 = vadd.f32 %v616_v21, %v598_v20  ;;  %v158_v24 = vpop.f32.mrf.mxu0 }
  0xc9   :  { %v324_v25 = vpop.f32.mrf.mxu1 }
  0xca   :  { %v396_v26 = vadd.f32 %v751_v22, %v333_v23  ;;  %v325_v27 = vadd.f32 %v324_v25, %v158_v24  ;;  %v599_v28 = vpop.f32.mrf.mxu0 }
  0xcb   :  { %v617_v29 = vpop.f32.mrf.mxu1 }
  0xcc   :  { %v412_v30 = vmax.f32 %v396_v26, 0.0  ;;  %v394_v31 = vadd.f32 %v751_v22, %v325_v27  ;;  %v336_v32 = vadd.f32 %v617_v29, %v599_v28  ;;  %v161_v33 = vpop.f32.mrf.mxu0 }
  0xcd   :  { %v327_v34 = vpop.f32.mrf.mxu1 }
  0xce   :  { %v562_v35 = vpack.c.bf16 %v412_v30, %v412_v30  ;;  %v410_v36 = vmax.f32 %v394_v31, 0.0  ;;  %v397_v37 = vadd.f32 %v751_v22, %v336_v32  ;;  %v328_v38 = vadd.f32 %v327_v34, %v161_v33  ;;  %v602_v39 = vpop.f32.mrf.mxu0 }
  0xcf   :  { %v620_v40 = vpop.f32.mrf.mxu1 }
  0xd0   :  { %493 = vst.msk [vmem:[%s838_s5 + $0x8] sm:$0xf] %vm490_vm4, %v562_v35  ;;  %v560_v41 = vpack.c.bf16 %v410_v36, %v410_v36  ;;  %v413_v42 = vmax.f32 %v397_v37, 0.0  ;;  %v395_v43 = vadd.f32 %v751_v22, %v328_v38  ;;  %v349_v44 = vadd.f32 %v620_v40, %v602_v39  ;;  %v174_v45 = vpop.f32.mrf.mxu0 }
  0xd1   :  { %v340_v46 = vpop.f32.mrf.mxu1 }
  0xd2   :  { %491 = vst.msk [vmem:[%s838_s5] sm:$0xf] %vm490_vm4, %v560_v41  ;;  %v563_v47 = vpack.c.bf16 %v413_v42, %v413_v42  ;;  %v411_v48 = vmax.f32 %v395_v43, 0.0  ;;  %v400_v49 = vadd.f32 %v751_v22, %v349_v44  ;;  %v341_v50 = vadd.f32 %v340_v46, %v174_v45  ;;  %v603_v51 = vpop.f32.mrf.mxu0 }
  0xd3   :  { %v621_v52 = vpop.f32.mrf.mxu1 }
  0xd4   :  { %494 = vst.msk [vmem:[%s838_s5 + $0xc] sm:$0xf] %vm490_vm4, %v563_v47  ;;  %v561_v53 = vpack.c.bf16 %v411_v48, %v411_v48  ;;  %v416_v54 = vmax.f32 %v400_v49, 0.0  ;;  %v398_v55 = vadd.f32 %v751_v22, %v341_v50  ;;  %v352_v56 = vadd.f32 %v621_v52, %v603_v51  ;;  %v177_v57 = vpop.f32.mrf.mxu0 }
  0xd5   :  { %v343_v58 = vpop.f32.mrf.mxu1 }
  0xd6   :  { %492 = vst.msk [vmem:[%s838_s5 + $0x4] sm:$0xf] %vm490_vm4, %v561_v53  ;;  %v566_v59 = vpack.c.bf16 %v416_v54, %v416_v54  ;;  %v414_v60 = vmax.f32 %v398_v55, 0.0  ;;  %v401_v61 = vadd.f32 %v751_v22, %v352_v56  ;;  %v344_v62 = vadd.f32 %v343_v58, %v177_v57  ;;  %v606_v63 = vpop.f32.mrf.mxu0 }
  0xd7   :  { %v624_v0 = vpop.f32.mrf.mxu1 }
  0xd8   :  { %497 = vst.msk [vmem:[%s838_s5 + $0x18] sm:$0xf] %vm490_vm4, %v566_v59  ;;  %v564_v1 = vpack.c.bf16 %v414_v60, %v414_v60  ;;  %v417_v2 = vmax.f32 %v401_v61, 0.0  ;;  %v399_v3 = vadd.f32 %v751_v22, %v344_v62  ;;  %v365_v4 = vadd.f32 %v624_v0, %v606_v63  ;;  %v190_v5 = vpop.f32.mrf.mxu0 }
  0xd9   :  { %v356_v6 = vpop.f32.mrf.mxu1 }
  0xda   :  { %495 = vst.msk [vmem:[%s838_s5 + $0x10] sm:$0xf] %vm490_vm4, %v564_v1  ;;  %v567_v7 = vpack.c.bf16 %v417_v2, %v417_v2  ;;  %v415_v8 = vmax.f32 %v399_v3, 0.0  ;;  %v404_v9 = vadd.f32 %v751_v22, %v365_v4  ;;  %v357_v10 = vadd.f32 %v356_v6, %v190_v5  ;;  %v607_v11 = vpop.f32.mrf.mxu0 }
  0xdb   :  { %v625_v12 = vpop.f32.mrf.mxu1 }
  0xdc   :  { %498 = vst.msk [vmem:[%s838_s5 + $0x1c] sm:$0xf] %vm490_vm4, %v567_v7  ;;  %v565_v13 = vpack.c.bf16 %v415_v8, %v415_v8  ;;  %v420_v14 = vmax.f32 %v404_v9, 0.0  ;;  %v402_v15 = vadd.f32 %v751_v22, %v357_v10  ;;  %v368_v16 = vadd.f32 %v625_v12, %v607_v11  ;;  %v193_v17 = vpop.f32.mrf.mxu0 }
  0xdd   :  { %v359_v18 = vpop.f32.mrf.mxu1 }
  0xde   :  { %496 = vst.msk [vmem:[%s838_s5 + $0x14] sm:$0xf] %vm490_vm4, %v565_v13  ;;  %v570_v19 = vpack.c.bf16 %v420_v14, %v420_v14  ;;  %v418_v20 = vmax.f32 %v402_v15, 0.0  ;;  %v405_v21 = vadd.f32 %v751_v22, %v368_v16  ;;  %v360_v23 = vadd.f32 %v359_v18, %v193_v17  ;;  %v610_v24 = vpop.f32.mrf.mxu0 }
  0xdf   :  { %v628_v25 = vpop.f32.mrf.mxu1 }
  0xe0   :  { %501 = vst.msk [vmem:[%s838_s5 + $0x28] sm:$0xf] %vm490_vm4, %v570_v19  ;;  %v568_v26 = vpack.c.bf16 %v418_v20, %v418_v20  ;;  %v421_v27 = vmax.f32 %v405_v21, 0.0  ;;  %v403_v28 = vadd.f32 %v751_v22, %v360_v23  ;;  %v381_v29 = vadd.f32 %v628_v25, %v610_v24  ;;  %v206_v30 = vpop.f32.mrf.mxu0 }
  0xe1   :  { %v372_v31 = vpop.f32.mrf.mxu1 }
  0xe2   :  { %499 = vst.msk [vmem:[%s838_s5 + $0x20] sm:$0xf] %vm490_vm4, %v568_v26  ;;  %v571_v32 = vpack.c.bf16 %v421_v27, %v421_v27  ;;  %v419_v33 = vmax.f32 %v403_v28, 0.0  ;;  %v408_v34 = vadd.f32 %v751_v22, %v381_v29  ;;  %v373_v35 = vadd.f32 %v372_v31, %v206_v30  ;;  %v611_v36 = vpop.f32.mrf.mxu0 }
  0xe3   :  { %v629_v37 = vpop.f32.mrf.mxu1 }
  0xe4   :  { %502 = vst.msk [vmem:[%s838_s5 + $0x2c] sm:$0xf] %vm490_vm4, %v571_v32  ;;  %v569_v38 = vpack.c.bf16 %v419_v33, %v419_v33  ;;  %v424_v39 = vmax.f32 %v408_v34, 0.0  ;;  %v406_v40 = vadd.f32 %v751_v22, %v373_v35  ;;  %v384_v41 = vadd.f32 %v629_v37, %v611_v36  ;;  %v209_v42 = vpop.f32.mrf.mxu0 }
  0xe5   :  { %v375_v43 = vpop.f32.mrf.mxu1 }
  0xe6   :  { %500 = vst.msk [vmem:[%s838_s5 + $0x24] sm:$0xf] %vm490_vm4, %v569_v38  ;;  %v574_v44 = vpack.c.bf16 %v424_v39, %v424_v39  ;;  %v422_v45 = vmax.f32 %v406_v40, 0.0  ;;  %v409_v46 = vadd.f32 %v751_v22, %v384_v41  ;;  %v376_v47 = vadd.f32 %v375_v43, %v209_v42 }
  0xe8   :  { %505 = vst.msk [vmem:[%s838_s5 + $0x38] sm:$0xf] %vm490_vm4, %v574_v44  ;;  %v572_v48 = vpack.c.bf16 %v422_v45, %v422_v45  ;;  %v425_v49 = vmax.f32 %v409_v46, 0.0  ;;  %v407_v50 = vadd.f32 %v751_v22, %v376_v47 }
  0xea   :  { %503 = vst.msk [vmem:[%s838_s5 + $0x30] sm:$0xf] %vm490_vm4, %v572_v48  ;;  %v575_v51 = vpack.c.bf16 %v425_v49, %v425_v49  ;;  %v423_v52 = vmax.f32 %v407_v50, 0.0 }
  0xec   :  { %506 = vst.msk [vmem:[%s838_s5 + $0x3c] sm:$0xf] %vm490_vm4, %v575_v51  ;;  %v573_v53 = vpack.c.bf16 %v423_v52, %v423_v52 }
  0xee   :  { %504 = vst.msk [vmem:[%s838_s5 + $0x34] sm:$0xf] %vm490_vm4, %v573_v53 }

// kernel: xblock_forward_pallas.3
= control target key start
LH: loop header
LB: loop body
LE: loop exit
PB: predicated region body
PF: predicated region fallthrough
CT: control target
= control target key end

     0   :  { %vm344_vm0 = vcmask 1043456   ;;  %vm247_vm1 = vcmask 64512   ;;  %vm957_vm2 = vcmask 27648   ;;  %s1830_s1 = inlined_call_operand.vmem [shape: bf16[8,4], index: 1, kind: input, shape index: {}]   ;;  %s1831_s0 = inlined_call_operand.vmem [shape: bf16[512,8], index: 0, kind: input, shape index: {}]   ;;  %s1832_s2 = inlined_call_operand.vmem [shape: f32[1,4], index: 2, kind: input, shape index: {}]   ;;  %s1833_s3 = inlined_call_operand.vmem [shape: bf16[512,4], index: 3, kind: output, shape index: {}]  }
   0x1   :  { %v79_v0 = vld [vmem:[%s1830_s1] sm:$0xf]  ;;  %v1324_v4 = vld [vmem:[%s1831_s0 + $0x8] sm:$0xff]   ;;  %v1326_v6 = vld [vmem:[%s1831_s0 + $0x10] sm:$0xff]  }
   0x2   :  { %1320 = vmatprep.subr.msk.bf16.mxu0 %vm344_vm0, %v79_v0  ;;  %1321 = vmatprep.subr.msk.bf16.mxu1 %vm344_vm0, %v79_v0  ;;  %v346_v1 = vsel %vm344_vm0, %v79_v0, 0  ;;  %v1322_v2 = vld [vmem:[%s1831_s0] sm:$0xff]   ;;  %v1325_v5 = vld [vmem:[%s1831_s0 + $0x88] sm:$0xff]   ;;  %v1327_v7 = vld [vmem:[%s1831_s0 + $0x90] sm:$0xff]  }
   0x3   :  { %1253 = vmatpush3.bf16.msra.mxu0 %v346_v1  ;;  %1319 = vmatpush3.bf16.msra.mxu1 %v346_v1  ;;  %v1323_v3 = vld [vmem:[%s1831_s0 + $0x80] sm:$0xff]   ;;  %v1328_v8 = vld [vmem:[%s1831_s0 + $0x18] sm:$0xff]   ;;  %v1332_v12 = vld [vmem:[%s1831_s0 + $0x28] sm:$0xff]  }
   0x4   :  { %1254 = vmatprep.mubr.msk.bf16.mxu0 %vm247_vm1, %v1322_v2  ;;  %1286 = vmatprep.mubr.msk.bf16.mxu1 %vm247_vm1, %v1323_v3  ;;  %v1329_v9 = vld [vmem:[%s1831_s0 + $0x98] sm:$0xff]   ;;  %v1330_v10 = vld [vmem:[%s1831_s0 + $0x20] sm:$0xff]   ;;  %v1333_v13 = vld [vmem:[%s1831_s0 + $0xa8] sm:$0xff]  }
   0x5   :  { %v1331_v11 = vld [vmem:[%s1831_s0 + $0xa0] sm:$0xff]   ;;  %v1334_v14 = vld [vmem:[%s1831_s0 + $0x30] sm:$0xff]   ;;  %v1336_v16 = vld [vmem:[%s1831_s0 + $0x38] sm:$0xff]  }
   0x6   :  { %1255 = vmatmul.mubr.msk.bf16.vlgmr.msra.gmra.mxu0 %vm247_vm1, %v1324_v4  ;;  %1287 = vmatmul.mubr.msk.bf16.vlgmr.msra.gmra.mxu1 %vm247_vm1, %v1325_v5  ;;  %v1335_v15 = vld [vmem:[%s1831_s0 + $0xb0] sm:$0xff]   ;;  %v1337_v17 = vld [vmem:[%s1831_s0 + $0xb8] sm:$0xff]   ;;  %v1338_v18 = vld [vmem:[%s1831_s0 + $0x40] sm:$0xff]  }
   0x7   :  { %1258 = vmatprep.mubr.msk.bf16.mxu0 %vm247_vm1, %v1326_v6  ;;  %1290 = vmatprep.mubr.msk.bf16.mxu1 %vm247_vm1, %v1327_v7  ;;  %v1339_v19 = vld [vmem:[%s1831_s0 + $0xc0] sm:$0xff]   ;;  %v1340_v20 = vld [vmem:[%s1831_s0 + $0x48] sm:$0xff]   ;;  %v1342_v22 = vld [vmem:[%s1831_s0 + $0x50] sm:$0xff]  }
   0x8   :  { %v1341_v21 = vld [vmem:[%s1831_s0 + $0xc8] sm:$0xff]   ;;  %v1343_v23 = vld [vmem:[%s1831_s0 + $0xd0] sm:$0xff]   ;;  %v1344_v24 = vld [vmem:[%s1831_s0 + $0x58] sm:$0xff]  }
   0x9   :  { %v1345_v25 = vld [vmem:[%s1831_s0 + $0xd8] sm:$0xff]   ;;  %v1346_v26 = vld [vmem:[%s1831_s0 + $0x60] sm:$0xff]   ;;  %v1348_v28 = vld [vmem:[%s1831_s0 + $0x68] sm:$0xff]  }
   0xa   :  { %v1347_v27 = vld [vmem:[%s1831_s0 + $0xe0] sm:$0xff]   ;;  %v1349_v29 = vld [vmem:[%s1831_s0 + $0xe8] sm:$0xff]   ;;  %v1350_v30 = vld [vmem:[%s1831_s0 + $0x70] sm:$0xff]  }
   0xb   :  { %v1351_v31 = vld [vmem:[%s1831_s0 + $0xf0] sm:$0xff]   ;;  %v1352_v32 = vld [vmem:[%s1831_s0 + $0x78] sm:$0xff]   ;;  %v1508_v34 = vld [vmem:[%s1832_s2] ss:$0 sm:$0xff] }
   0xc   :  { %v1353_v33 = vld [vmem:[%s1831_s0 + $0xf8] sm:$0xff]  }
   0xe   :  { %1259 = vmatmul.mubr.msk.bf16.gmra.mxu0 %vm247_vm1, %v1328_v8  ;;  %1291 = vmatmul.mubr.msk.bf16.gmra.mxu1 %vm247_vm1, %v1329_v9 }
   0xf   :  { %1262 = vmatprep.mubr.msk.bf16.mxu0 %vm247_vm1, %v1330_v10  ;;  %1294 = vmatprep.mubr.msk.bf16.mxu1 %vm247_vm1, %v1331_v11 }
  0x16   :  { %1263 = vmatmul.mubr.msk.bf16.gmra.mxu0 %vm247_vm1, %v1332_v12  ;;  %1295 = vmatmul.mubr.msk.bf16.gmra.mxu1 %vm247_vm1, %v1333_v13 }
  0x17   :  { %1266 = vmatprep.mubr.msk.bf16.mxu0 %vm247_vm1, %v1334_v14  ;;  %1298 = vmatprep.mubr.msk.bf16.mxu1 %vm247_vm1, %v1335_v15 }
  0x1e   :  { %1267 = vmatmul.mubr.msk.bf16.gmra.mxu0 %vm247_vm1, %v1336_v16  ;;  %1299 = vmatmul.mubr.msk.bf16.gmra.mxu1 %vm247_vm1, %v1337_v17 }
  0x1f   :  { %1270 = vmatprep.mubr.msk.bf16.mxu0 %vm247_vm1, %v1338_v18  ;;  %1302 = vmatprep.mubr.msk.bf16.mxu1 %vm247_vm1, %v1339_v19 }
  0x26   :  { %1271 = vmatmul.mubr.msk.bf16.gmra.mxu0 %vm247_vm1, %v1340_v20  ;;  %1303 = vmatmul.mubr.msk.bf16.gmra.mxu1 %vm247_vm1, %v1341_v21 }
  0x27   :  { %1274 = vmatprep.mubr.msk.bf16.mxu0 %vm247_vm1, %v1342_v22  ;;  %1306 = vmatprep.mubr.msk.bf16.mxu1 %vm247_vm1, %v1343_v23 }
  0x2e   :  { %1275 = vmatmul.mubr.msk.bf16.gmra.mxu0 %vm247_vm1, %v1344_v24  ;;  %1307 = vmatmul.mubr.msk.bf16.gmra.mxu1 %vm247_vm1, %v1345_v25 }
  0x2f   :  { %1278 = vmatprep.mubr.msk.bf16.mxu0 %vm247_vm1, %v1346_v26  ;;  %1310 = vmatprep.mubr.msk.bf16.mxu1 %vm247_vm1, %v1347_v27 }
  0x36   :  { %1279 = vmatmul.mubr.msk.bf16.gmra.mxu0 %vm247_vm1, %v1348_v28  ;;  %1311 = vmatmul.mubr.msk.bf16.gmra.mxu1 %vm247_vm1, %v1349_v29 }
  0x37   :  { %1282 = vmatprep.mubr.msk.bf16.mxu0 %vm247_vm1, %v1350_v30  ;;  %1314 = vmatprep.mubr.msk.bf16.mxu1 %vm247_vm1, %v1351_v31 }
  0x3e   :  { %1283 = vmatmul.mubr.msk.bf16.gmra.mxu0 %vm247_vm1, %v1352_v32  ;;  %1315 = vmatmul.mubr.msk.bf16.gmra.mxu1 %vm247_vm1, %v1353_v33 }
  0xc6   :  { %v1256_v35 = vpop.f32.mrf.mxu0  ;;  %v1288_v37 = vpop.f32.mrf.mxu1 }
  0xc7   :  { %v391_v36 = vadd.f32 %v1256_v35, %v1508_v34  ;;  %v519_v38 = vadd.f32 %v1288_v37, %v1508_v34 }
  0xc8   :  { %v382_v39 = vpop.f32.mrf.mxu0  ;;  %v510_v42 = vpop.f32.mrf.mxu1 }
  0xc9   :  { %v639_v40 = vmax.f32 %v391_v36, 0.0  ;;  %v383_v41 = vadd.f32 %v1508_v34, %v382_v39  ;;  %v671_v43 = vmax.f32 %v519_v38, 0.0  ;;  %v511_v44 = vadd.f32 %v1508_v34, %v510_v42 }
  0xca   :  { %v1257_v45 = vpop.f32.mrf.mxu0  ;;  %v1289_v49 = vpop.f32.mrf.mxu1 }
  0xcb   :  { %v1157_v46 = vpack.c.bf16 %v639_v40, %v639_v40  ;;  %v637_v47 = vmax.f32 %v383_v41, 0.0  ;;  %v394_v48 = vadd.f32 %v1257_v45, %v1508_v34  ;;  %v1189_v50 = vpack.c.bf16 %v671_v43, %v671_v43 }
  0xcc   :  { %v669_v51 = vmax.f32 %v511_v44, 0.0  ;;  %v522_v52 = vadd.f32 %v1289_v49, %v1508_v34  ;;  %v385_v53 = vpop.f32.mrf.mxu0  ;;  %v513_v57 = vpop.f32.mrf.mxu1 }
  0xcd   :  { %960 = vst.msk [vmem:[%s1833_s3 + $0x8] sm:$0xf] %vm957_vm2, %v1157_v46  ;;  %v1155_v54 = vpack.c.bf16 %v637_v47, %v637_v47  ;;  %v640_v55 = vmax.f32 %v394_v48, 0.0  ;;  %v386_v56 = vadd.f32 %v1508_v34, %v385_v53  ;;  %992 = vst.msk [vmem:[%s1833_s3 + $0x88] sm:$0xf] %vm957_vm2, %v1189_v50  ;;  %v514_v60 = vadd.f32 %v1508_v34, %v513_v57 }
  0xce   :  { %v1187_v58 = vpack.c.bf16 %v669_v51, %v669_v51  ;;  %v672_v59 = vmax.f32 %v522_v52, 0.0  ;;  %v1260_v61 = vpop.f32.mrf.mxu0  ;;  %v1292_v1 = vpop.f32.mrf.mxu1 }
  0xcf   :  { %958 = vst.msk [vmem:[%s1833_s3] sm:$0xf] %vm957_vm2, %v1155_v54  ;;  %v1158_v62 = vpack.c.bf16 %v640_v55, %v640_v55  ;;  %v638_v63 = vmax.f32 %v386_v56, 0.0  ;;  %v407_v0 = vadd.f32 %v1260_v61, %v1508_v34  ;;  %v670_v3 = vmax.f32 %v514_v60, 0.0 }
  0xd0   :  { %990 = vst.msk [vmem:[%s1833_s3 + $0x80] sm:$0xf] %vm957_vm2, %v1187_v58  ;;  %v1190_v2 = vpack.c.bf16 %v672_v59, %v672_v59  ;;  %v535_v4 = vadd.f32 %v1292_v1, %v1508_v34  ;;  %v398_v5 = vpop.f32.mrf.mxu0  ;;  %v526_v9 = vpop.f32.mrf.mxu1 }
  0xd1   :  { %961 = vst.msk [vmem:[%s1833_s3 + $0xc] sm:$0xf] %vm957_vm2, %v1158_v62  ;;  %v1156_v6 = vpack.c.bf16 %v638_v63, %v638_v63  ;;  %v643_v7 = vmax.f32 %v407_v0, 0.0  ;;  %v399_v8 = vadd.f32 %v1508_v34, %v398_v5  ;;  %v1188_v10 = vpack.c.bf16 %v670_v3, %v670_v3 }
  0xd2   :  { %993 = vst.msk [vmem:[%s1833_s3 + $0x8c] sm:$0xf] %vm957_vm2, %v1190_v2  ;;  %v675_v11 = vmax.f32 %v535_v4, 0.0  ;;  %v527_v12 = vadd.f32 %v1508_v34, %v526_v9  ;;  %v1261_v13 = vpop.f32.mrf.mxu0  ;;  %v1293_v17 = vpop.f32.mrf.mxu1 }
  0xd3   :  { %959 = vst.msk [vmem:[%s1833_s3 + $0x4] sm:$0xf] %vm957_vm2, %v1156_v6  ;;  %v1161_v14 = vpack.c.bf16 %v643_v7, %v643_v7  ;;  %v641_v15 = vmax.f32 %v399_v8, 0.0  ;;  %v410_v16 = vadd.f32 %v1261_v13, %v1508_v34  ;;  %991 = vst.msk [vmem:[%s1833_s3 + $0x84] sm:$0xf] %vm957_vm2, %v1188_v10  ;;  %v538_v20 = vadd.f32 %v1293_v17, %v1508_v34 }
  0xd4   :  { %v1193_v18 = vpack.c.bf16 %v675_v11, %v675_v11  ;;  %v673_v19 = vmax.f32 %v527_v12, 0.0  ;;  %v401_v21 = vpop.f32.mrf.mxu0  ;;  %v529_v25 = vpop.f32.mrf.mxu1 }
  0xd5   :  { %964 = vst.msk [vmem:[%s1833_s3 + $0x18] sm:$0xf] %vm957_vm2, %v1161_v14  ;;  %v1159_v22 = vpack.c.bf16 %v641_v15, %v641_v15  ;;  %v644_v23 = vmax.f32 %v410_v16, 0.0  ;;  %v402_v24 = vadd.f32 %v1508_v34, %v401_v21  ;;  %v676_v27 = vmax.f32 %v538_v20, 0.0 }
  0xd6   :  { %996 = vst.msk [vmem:[%s1833_s3 + $0x98] sm:$0xf] %vm957_vm2, %v1193_v18  ;;  %v1191_v26 = vpack.c.bf16 %v673_v19, %v673_v19  ;;  %v530_v28 = vadd.f32 %v1508_v34, %v529_v25  ;;  %v1264_v29 = vpop.f32.mrf.mxu0  ;;  %v1296_v33 = vpop.f32.mrf.mxu1 }
  0xd7   :  { %962 = vst.msk [vmem:[%s1833_s3 + $0x10] sm:$0xf] %vm957_vm2, %v1159_v22  ;;  %v1162_v30 = vpack.c.bf16 %v644_v23, %v644_v23  ;;  %v642_v31 = vmax.f32 %v402_v24, 0.0  ;;  %v423_v32 = vadd.f32 %v1264_v29, %v1508_v34  ;;  %v1194_v35 = vpack.c.bf16 %v676_v27, %v676_v27 }
  0xd8   :  { %994 = vst.msk [vmem:[%s1833_s3 + $0x90] sm:$0xf] %vm957_vm2, %v1191_v26  ;;  %v674_v36 = vmax.f32 %v530_v28, 0.0  ;;  %v551_v37 = vadd.f32 %v1296_v33, %v1508_v34  ;;  %v414_v38 = vpop.f32.mrf.mxu0  ;;  %v542_v42 = vpop.f32.mrf.mxu1 }
  0xd9   :  { %965 = vst.msk [vmem:[%s1833_s3 + $0x1c] sm:$0xf] %vm957_vm2, %v1162_v30  ;;  %v1160_v39 = vpack.c.bf16 %v642_v31, %v642_v31  ;;  %v647_v40 = vmax.f32 %v423_v32, 0.0  ;;  %v415_v41 = vadd.f32 %v1508_v34, %v414_v38  ;;  %997 = vst.msk [vmem:[%s1833_s3 + $0x9c] sm:$0xf] %vm957_vm2, %v1194_v35  ;;  %v543_v45 = vadd.f32 %v1508_v34, %v542_v42 }
  0xda   :  { %v1192_v43 = vpack.c.bf16 %v674_v36, %v674_v36  ;;  %v679_v44 = vmax.f32 %v551_v37, 0.0  ;;  %v1265_v46 = vpop.f32.mrf.mxu0  ;;  %v1297_v50 = vpop.f32.mrf.mxu1 }
  0xdb   :  { %963 = vst.msk [vmem:[%s1833_s3 + $0x14] sm:$0xf] %vm957_vm2, %v1160_v39  ;;  %v1165_v47 = vpack.c.bf16 %v647_v40, %v647_v40  ;;  %v645_v48 = vmax.f32 %v415_v41, 0.0  ;;  %v426_v49 = vadd.f32 %v1265_v46, %v1508_v34  ;;  %v677_v52 = vmax.f32 %v543_v45, 0.0 }
  0xdc   :  { %995 = vst.msk [vmem:[%s1833_s3 + $0x94] sm:$0xf] %vm957_vm2, %v1192_v43  ;;  %v1197_v51 = vpack.c.bf16 %v679_v44, %v679_v44  ;;  %v554_v53 = vadd.f32 %v1297_v50, %v1508_v34  ;;  %v417_v54 = vpop.f32.mrf.mxu0  ;;  %v545_v58 = vpop.f32.mrf.mxu1 }
  0xdd   :  { %968 = vst.msk [vmem:[%s1833_s3 + $0x28] sm:$0xf] %vm957_vm2, %v1165_v47  ;;  %v1163_v55 = vpack.c.bf16 %v645_v48, %v645_v48  ;;  %v648_v56 = vmax.f32 %v426_v49, 0.0  ;;  %v418_v57 = vadd.f32 %v1508_v34, %v417_v54  ;;  %v1195_v59 = vpack.c.bf16 %v677_v52, %v677_v52 }
  0xde   :  { %1000 = vst.msk [vmem:[%s1833_s3 + $0xa8] sm:$0xf] %vm957_vm2, %v1197_v51  ;;  %v680_v60 = vmax.f32 %v554_v53, 0.0  ;;  %v546_v61 = vadd.f32 %v1508_v34, %v545_v58  ;;  %v1268_v62 = vpop.f32.mrf.mxu0  ;;  %v1300_v2 = vpop.f32.mrf.mxu1 }
  0xdf   :  { %966 = vst.msk [vmem:[%s1833_s3 + $0x20] sm:$0xf] %vm957_vm2, %v1163_v55  ;;  %v1166_v63 = vpack.c.bf16 %v648_v56, %v648_v56  ;;  %v646_v0 = vmax.f32 %v418_v57, 0.0  ;;  %v439_v1 = vadd.f32 %v1268_v62, %v1508_v34  ;;  %998 = vst.msk [vmem:[%s1833_s3 + $0xa0] sm:$0xf] %vm957_vm2, %v1195_v59  ;;  %v567_v5 = vadd.f32 %v1300_v2, %v1508_v34 }
  0xe0   :  { %v1198_v3 = vpack.c.bf16 %v680_v60, %v680_v60  ;;  %v678_v4 = vmax.f32 %v546_v61, 0.0  ;;  %v430_v6 = vpop.f32.mrf.mxu0  ;;  %v558_v10 = vpop.f32.mrf.mxu1 }
  0xe1   :  { %969 = vst.msk [vmem:[%s1833_s3 + $0x2c] sm:$0xf] %vm957_vm2, %v1166_v63  ;;  %v1164_v7 = vpack.c.bf16 %v646_v0, %v646_v0  ;;  %v651_v8 = vmax.f32 %v439_v1, 0.0  ;;  %v431_v9 = vadd.f32 %v1508_v34, %v430_v6  ;;  %v683_v12 = vmax.f32 %v567_v5, 0.0 }
  0xe2   :  { %1001 = vst.msk [vmem:[%s1833_s3 + $0xac] sm:$0xf] %vm957_vm2, %v1198_v3  ;;  %v1196_v11 = vpack.c.bf16 %v678_v4, %v678_v4  ;;  %v559_v13 = vadd.f32 %v1508_v34, %v558_v10  ;;  %v1269_v14 = vpop.f32.mrf.mxu0  ;;  %v1301_v18 = vpop.f32.mrf.mxu1 }
  0xe3   :  { %967 = vst.msk [vmem:[%s1833_s3 + $0x24] sm:$0xf] %vm957_vm2, %v1164_v7  ;;  %v1169_v15 = vpack.c.bf16 %v651_v8, %v651_v8  ;;  %v649_v16 = vmax.f32 %v431_v9, 0.0  ;;  %v442_v17 = vadd.f32 %v1269_v14, %v1508_v34  ;;  %v1201_v19 = vpack.c.bf16 %v683_v12, %v683_v12 }
  0xe4   :  { %999 = vst.msk [vmem:[%s1833_s3 + $0xa4] sm:$0xf] %vm957_vm2, %v1196_v11  ;;  %v681_v20 = vmax.f32 %v559_v13, 0.0  ;;  %v570_v21 = vadd.f32 %v1301_v18, %v1508_v34  ;;  %v433_v22 = vpop.f32.mrf.mxu0  ;;  %v561_v26 = vpop.f32.mrf.mxu1 }
  0xe5   :  { %972 = vst.msk [vmem:[%s1833_s3 + $0x38] sm:$0xf] %vm957_vm2, %v1169_v15  ;;  %v1167_v23 = vpack.c.bf16 %v649_v16, %v649_v16  ;;  %v652_v24 = vmax.f32 %v442_v17, 0.0  ;;  %v434_v25 = vadd.f32 %v1508_v34, %v433_v22  ;;  %1004 = vst.msk [vmem:[%s1833_s3 + $0xb8] sm:$0xf] %vm957_vm2, %v1201_v19  ;;  %v562_v29 = vadd.f32 %v1508_v34, %v561_v26 }
  0xe6   :  { %v1199_v27 = vpack.c.bf16 %v681_v20, %v681_v20  ;;  %v684_v28 = vmax.f32 %v570_v21, 0.0  ;;  %v1272_v30 = vpop.f32.mrf.mxu0  ;;  %v1304_v35 = vpop.f32.mrf.mxu1 }
  0xe7   :  { %970 = vst.msk [vmem:[%s1833_s3 + $0x30] sm:$0xf] %vm957_vm2, %v1167_v23  ;;  %v1170_v31 = vpack.c.bf16 %v652_v24, %v652_v24  ;;  %v650_v32 = vmax.f32 %v434_v25, 0.0  ;;  %v455_v33 = vadd.f32 %v1272_v30, %v1508_v34  ;;  %v682_v37 = vmax.f32 %v562_v29, 0.0 }
  0xe8   :  { %1002 = vst.msk [vmem:[%s1833_s3 + $0xb0] sm:$0xf] %vm957_vm2, %v1199_v27  ;;  %v1202_v36 = vpack.c.bf16 %v684_v28, %v684_v28  ;;  %v583_v38 = vadd.f32 %v1304_v35, %v1508_v34  ;;  %v446_v39 = vpop.f32.mrf.mxu0  ;;  %v574_v43 = vpop.f32.mrf.mxu1 }
  0xe9   :  { %973 = vst.msk [vmem:[%s1833_s3 + $0x3c] sm:$0xf] %vm957_vm2, %v1170_v31  ;;  %v1168_v40 = vpack.c.bf16 %v650_v32, %v650_v32  ;;  %v655_v41 = vmax.f32 %v455_v33, 0.0  ;;  %v447_v42 = vadd.f32 %v1508_v34, %v446_v39  ;;  %v1200_v44 = vpack.c.bf16 %v682_v37, %v682_v37 }
  0xea   :  { %1005 = vst.msk [vmem:[%s1833_s3 + $0xbc] sm:$0xf] %vm957_vm2, %v1202_v36  ;;  %v687_v45 = vmax.f32 %v583_v38, 0.0  ;;  %v575_v46 = vadd.f32 %v1508_v34, %v574_v43  ;;  %v1273_v47 = vpop.f32.mrf.mxu0  ;;  %v1305_v51 = vpop.f32.mrf.mxu1 }
  0xeb   :  { %971 = vst.msk [vmem:[%s1833_s3 + $0x34] sm:$0xf] %vm957_vm2, %v1168_v40  ;;  %v1173_v48 = vpack.c.bf16 %v655_v41, %v655_v41  ;;  %v653_v49 = vmax.f32 %v447_v42, 0.0  ;;  %v458_v50 = vadd.f32 %v1273_v47, %v1508_v34  ;;  %1003 = vst.msk [vmem:[%s1833_s3 + $0xb4] sm:$0xf] %vm957_vm2, %v1200_v44  ;;  %v586_v54 = vadd.f32 %v1305_v51, %v1508_v34 }
  0xec   :  { %v1205_v52 = vpack.c.bf16 %v687_v45, %v687_v45  ;;  %v685_v53 = vmax.f32 %v575_v46, 0.0  ;;  %v449_v55 = vpop.f32.mrf.mxu0  ;;  %v577_v59 = vpop.f32.mrf.mxu1 }
  0xed   :  { %976 = vst.msk [vmem:[%s1833_s3 + $0x48] sm:$0xf] %vm957_vm2, %v1173_v48  ;;  %v1171_v56 = vpack.c.bf16 %v653_v49, %v653_v49  ;;  %v656_v57 = vmax.f32 %v458_v50, 0.0  ;;  %v450_v58 = vadd.f32 %v1508_v34, %v449_v55  ;;  %v688_v61 = vmax.f32 %v586_v54, 0.0 }
  0xee   :  { %1008 = vst.msk [vmem:[%s1833_s3 + $0xc8] sm:$0xf] %vm957_vm2, %v1205_v52  ;;  %v1203_v60 = vpack.c.bf16 %v685_v53, %v685_v53  ;;  %v578_v62 = vadd.f32 %v1508_v34, %v577_v59  ;;  %v1276_v63 = vpop.f32.mrf.mxu0  ;;  %v1308_v3 = vpop.f32.mrf.mxu1 }
  0xef   :  { %974 = vst.msk [vmem:[%s1833_s3 + $0x40] sm:$0xf] %vm957_vm2, %v1171_v56  ;;  %v1174_v0 = vpack.c.bf16 %v656_v57, %v656_v57  ;;  %v654_v1 = vmax.f32 %v450_v58, 0.0  ;;  %v471_v2 = vadd.f32 %v1276_v63, %v1508_v34  ;;  %v1206_v4 = vpack.c.bf16 %v688_v61, %v688_v61 }
  0xf0   :  { %1006 = vst.msk [vmem:[%s1833_s3 + $0xc0] sm:$0xf] %vm957_vm2, %v1203_v60  ;;  %v686_v5 = vmax.f32 %v578_v62, 0.0  ;;  %v599_v6 = vadd.f32 %v1308_v3, %v1508_v34  ;;  %v462_v7 = vpop.f32.mrf.mxu0  ;;  %v590_v11 = vpop.f32.mrf.mxu1 }
  0xf1   :  { %977 = vst.msk [vmem:[%s1833_s3 + $0x4c] sm:$0xf] %vm957_vm2, %v1174_v0  ;;  %v1172_v8 = vpack.c.bf16 %v654_v1, %v654_v1  ;;  %v659_v9 = vmax.f32 %v471_v2, 0.0  ;;  %v463_v10 = vadd.f32 %v1508_v34, %v462_v7  ;;  %1009 = vst.msk [vmem:[%s1833_s3 + $0xcc] sm:$0xf] %vm957_vm2, %v1206_v4  ;;  %v591_v14 = vadd.f32 %v1508_v34, %v590_v11 }
  0xf2   :  { %v1204_v12 = vpack.c.bf16 %v686_v5, %v686_v5  ;;  %v691_v13 = vmax.f32 %v599_v6, 0.0  ;;  %v1277_v15 = vpop.f32.mrf.mxu0  ;;  %v1309_v19 = vpop.f32.mrf.mxu1 }
  0xf3   :  { %975 = vst.msk [vmem:[%s1833_s3 + $0x44] sm:$0xf] %vm957_vm2, %v1172_v8  ;;  %v1177_v16 = vpack.c.bf16 %v659_v9, %v659_v9  ;;  %v657_v17 = vmax.f32 %v463_v10, 0.0  ;;  %v474_v18 = vadd.f32 %v1277_v15, %v1508_v34  ;;  %v689_v21 = vmax.f32 %v591_v14, 0.0 }
  0xf4   :  { %1007 = vst.msk [vmem:[%s1833_s3 + $0xc4] sm:$0xf] %vm957_vm2, %v1204_v12  ;;  %v1209_v20 = vpack.c.bf16 %v691_v13, %v691_v13  ;;  %v602_v22 = vadd.f32 %v1309_v19, %v1508_v34  ;;  %v465_v23 = vpop.f32.mrf.mxu0  ;;  %v593_v27 = vpop.f32.mrf.mxu1 }
  0xf5   :  { %980 = vst.msk [vmem:[%s1833_s3 + $0x58] sm:$0xf] %vm957_vm2, %v1177_v16  ;;  %v1175_v24 = vpack.c.bf16 %v657_v17, %v657_v17  ;;  %v660_v25 = vmax.f32 %v474_v18, 0.0  ;;  %v466_v26 = vadd.f32 %v1508_v34, %v465_v23  ;;  %v1207_v28 = vpack.c.bf16 %v689_v21, %v689_v21 }
  0xf6   :  { %1012 = vst.msk [vmem:[%s1833_s3 + $0xd8] sm:$0xf] %vm957_vm2, %v1209_v20  ;;  %v692_v29 = vmax.f32 %v602_v22, 0.0  ;;  %v594_v30 = vadd.f32 %v1508_v34, %v593_v27  ;;  %v1280_v31 = vpop.f32.mrf.mxu0  ;;  %v1312_v36 = vpop.f32.mrf.mxu1 }
  0xf7   :  { %978 = vst.msk [vmem:[%s1833_s3 + $0x50] sm:$0xf] %vm957_vm2, %v1175_v24  ;;  %v1178_v32 = vpack.c.bf16 %v660_v25, %v660_v25  ;;  %v658_v33 = vmax.f32 %v466_v26, 0.0  ;;  %v487_v35 = vadd.f32 %v1280_v31, %v1508_v34  ;;  %1010 = vst.msk [vmem:[%s1833_s3 + $0xd0] sm:$0xf] %vm957_vm2, %v1207_v28  ;;  %v615_v39 = vadd.f32 %v1312_v36, %v1508_v34 }
  0xf8   :  { %v1210_v37 = vpack.c.bf16 %v692_v29, %v692_v29  ;;  %v690_v38 = vmax.f32 %v594_v30, 0.0  ;;  %v478_v40 = vpop.f32.mrf.mxu0  ;;  %v606_v44 = vpop.f32.mrf.mxu1 }
  0xf9   :  { %981 = vst.msk [vmem:[%s1833_s3 + $0x5c] sm:$0xf] %vm957_vm2, %v1178_v32  ;;  %v1176_v41 = vpack.c.bf16 %v658_v33, %v658_v33  ;;  %v663_v42 = vmax.f32 %v487_v35, 0.0  ;;  %v479_v43 = vadd.f32 %v1508_v34, %v478_v40  ;;  %v695_v46 = vmax.f32 %v615_v39, 0.0 }
  0xfa   :  { %1013 = vst.msk [vmem:[%s1833_s3 + $0xdc] sm:$0xf] %vm957_vm2, %v1210_v37  ;;  %v1208_v45 = vpack.c.bf16 %v690_v38, %v690_v38  ;;  %v607_v47 = vadd.f32 %v1508_v34, %v606_v44  ;;  %v1281_v48 = vpop.f32.mrf.mxu0  ;;  %v1313_v52 = vpop.f32.mrf.mxu1 }
  0xfb   :  { %979 = vst.msk [vmem:[%s1833_s3 + $0x54] sm:$0xf] %vm957_vm2, %v1176_v41  ;;  %v1181_v49 = vpack.c.bf16 %v663_v42, %v663_v42  ;;  %v661_v50 = vmax.f32 %v479_v43, 0.0  ;;  %v490_v51 = vadd.f32 %v1281_v48, %v1508_v34  ;;  %v1213_v53 = vpack.c.bf16 %v695_v46, %v695_v46 }
  0xfc   :  { %1011 = vst.msk [vmem:[%s1833_s3 + $0xd4] sm:$0xf] %vm957_vm2, %v1208_v45  ;;  %v693_v54 = vmax.f32 %v607_v47, 0.0  ;;  %v618_v55 = vadd.f32 %v1313_v52, %v1508_v34  ;;  %v481_v56 = vpop.f32.mrf.mxu0  ;;  %v609_v60 = vpop.f32.mrf.mxu1 }
  0xfd   :  { %984 = vst.msk [vmem:[%s1833_s3 + $0x68] sm:$0xf] %vm957_vm2, %v1181_v49  ;;  %v1179_v57 = vpack.c.bf16 %v661_v50, %v661_v50  ;;  %v664_v58 = vmax.f32 %v490_v51, 0.0  ;;  %v482_v59 = vadd.f32 %v1508_v34, %v481_v56  ;;  %1016 = vst.msk [vmem:[%s1833_s3 + $0xe8] sm:$0xf] %vm957_vm2, %v1213_v53  ;;  %v610_v63 = vadd.f32 %v1508_v34, %v609_v60 }
  0xfe   :  { %v1211_v61 = vpack.c.bf16 %v693_v54, %v693_v54  ;;  %v696_v62 = vmax.f32 %v618_v55, 0.0  ;;  %v1284_v0 = vpop.f32.mrf.mxu0  ;;  %v1316_v4 = vpop.f32.mrf.mxu1 }
  0xff   :  { %982 = vst.msk [vmem:[%s1833_s3 + $0x60] sm:$0xf] %vm957_vm2, %v1179_v57  ;;  %v1182_v1 = vpack.c.bf16 %v664_v58, %v664_v58  ;;  %v662_v2 = vmax.f32 %v482_v59, 0.0  ;;  %v503_v3 = vadd.f32 %v1284_v0, %v1508_v34  ;;  %v694_v6 = vmax.f32 %v610_v63, 0.0 }
 0x100   :  { %1014 = vst.msk [vmem:[%s1833_s3 + $0xe0] sm:$0xf] %vm957_vm2, %v1211_v61  ;;  %v1214_v5 = vpack.c.bf16 %v696_v62, %v696_v62  ;;  %v631_v7 = vadd.f32 %v1316_v4, %v1508_v34  ;;  %v494_v8 = vpop.f32.mrf.mxu0  ;;  %v622_v12 = vpop.f32.mrf.mxu1 }
 0x101   :  { %985 = vst.msk [vmem:[%s1833_s3 + $0x6c] sm:$0xf] %vm957_vm2, %v1182_v1  ;;  %v1180_v9 = vpack.c.bf16 %v662_v2, %v662_v2  ;;  %v667_v10 = vmax.f32 %v503_v3, 0.0  ;;  %v495_v11 = vadd.f32 %v1508_v34, %v494_v8  ;;  %v1212_v13 = vpack.c.bf16 %v694_v6, %v694_v6 }
 0x102   :  { %1017 = vst.msk [vmem:[%s1833_s3 + $0xec] sm:$0xf] %vm957_vm2, %v1214_v5  ;;  %v699_v14 = vmax.f32 %v631_v7, 0.0  ;;  %v623_v15 = vadd.f32 %v1508_v34, %v622_v12  ;;  %v1285_v16 = vpop.f32.mrf.mxu0  ;;  %v1317_v20 = vpop.f32.mrf.mxu1 }
 0x103   :  { %983 = vst.msk [vmem:[%s1833_s3 + $0x64] sm:$0xf] %vm957_vm2, %v1180_v9  ;;  %v1185_v17 = vpack.c.bf16 %v667_v10, %v667_v10  ;;  %v665_v18 = vmax.f32 %v495_v11, 0.0  ;;  %v506_v19 = vadd.f32 %v1285_v16, %v1508_v34  ;;  %1015 = vst.msk [vmem:[%s1833_s3 + $0xe4] sm:$0xf] %vm957_vm2, %v1212_v13  ;;  %v634_v23 = vadd.f32 %v1317_v20, %v1508_v34 }
 0x104   :  { %v1217_v21 = vpack.c.bf16 %v699_v14, %v699_v14  ;;  %v697_v22 = vmax.f32 %v623_v15, 0.0  ;;  %v497_v24 = vpop.f32.mrf.mxu0  ;;  %v625_v28 = vpop.f32.mrf.mxu1 }
 0x105   :  { %988 = vst.msk [vmem:[%s1833_s3 + $0x78] sm:$0xf] %vm957_vm2, %v1185_v17  ;;  %v1183_v25 = vpack.c.bf16 %v665_v18, %v665_v18  ;;  %v668_v26 = vmax.f32 %v506_v19, 0.0  ;;  %v498_v27 = vadd.f32 %v1508_v34, %v497_v24  ;;  %v700_v30 = vmax.f32 %v634_v23, 0.0 }
 0x106   :  { %1020 = vst.msk [vmem:[%s1833_s3 + $0xf8] sm:$0xf] %vm957_vm2, %v1217_v21  ;;  %v1215_v29 = vpack.c.bf16 %v697_v22, %v697_v22  ;;  %v626_v31 = vadd.f32 %v1508_v34, %v625_v28 }
 0x107   :  { %986 = vst.msk [vmem:[%s1833_s3 + $0x70] sm:$0xf] %vm957_vm2, %v1183_v25  ;;  %v1186_v32 = vpack.c.bf16 %v668_v26, %v668_v26  ;;  %v666_v33 = vmax.f32 %v498_v27, 0.0  ;;  %v1218_v35 = vpack.c.bf16 %v700_v30, %v700_v30 }
 0x108   :  { %1018 = vst.msk [vmem:[%s1833_s3 + $0xf0] sm:$0xf] %vm957_vm2, %v1215_v29  ;;  %v698_v36 = vmax.f32 %v626_v31, 0.0 }
 0x109   :  { %989 = vst.msk [vmem:[%s1833_s3 + $0x7c] sm:$0xf] %vm957_vm2, %v1186_v32  ;;  %v1184_v34 = vpack.c.bf16 %v666_v33, %v666_v33  ;;  %1021 = vst.msk [vmem:[%s1833_s3 + $0xfc] sm:$0xf] %vm957_vm2, %v1218_v35 }
 0x10a   :  { %v1216_v37 = vpack.c.bf16 %v698_v36, %v698_v36 }
 0x10b   :  { %987 = vst.msk [vmem:[%s1833_s3 + $0x74] sm:$0xf] %vm957_vm2, %v1184_v34 }
 0x10c   :  { %1019 = vst.msk [vmem:[%s1833_s3 + $0xf4] sm:$0xf] %vm957_vm2, %v1216_v37 }

// kernel: xblock_forward_pallas.4
= control target key start
LH: loop header
LB: loop body
LE: loop exit
PB: predicated region body
PF: predicated region fallthrough
CT: control target
= control target key end

     0   :  { %s2877_s12 = smov 0   ;;  %s2879_s13 = smov 0   ;;  %s3243_s0 = inlined_call_operand.vmem [shape: bf16[2,4,160,4], index: 0, kind: input, shape index: {}]   ;;  %s3244_s1 = inlined_call_operand.vmem [shape: bf16[9,1,4,4], index: 1, kind: input, shape index: {}]   ;;  %s3245_s2 = inlined_call_operand.vmem [shape: f32[1,4], index: 2, kind: input, shape index: {}]   ;;  %s3246_s3 = inlined_call_operand.vmem [shape: bf16[2,8,8,4], index: 3, kind: output, shape index: {}]  }
   0x1   :  { %s2881_s14 = smov 0  }
   0x2 LB: > { %s22_s15 = sadd.s32 1, %s2851_s13  ;;  %p2234_p0 = scmp.ge.s32.totalorder %s2855_s14, 1  ;;  %s2855_s14 = sphi %s2881_s14, %s13_s14   ;;  %s2851_s13 = sphi %s2879_s13, %s3248_s13   ;;  %s2847_s12 = sphi %s2877_s12, %s3247_s12  }
   0x3   : > { %p23_p1 = scmp.ge.s32.totalorder %s22_s15, 2  ;;  %p173_p2 = scmp.lt.s32.totalorder %s2855_s14, 3 }
   0x5   : > { %s3250_s15 = smov (%p23_p1, %s22_s15), 0  ;;  %p174_p3 = pnand %p2234_p0, %p173_p2 }
   0x6   : > { %p210_p4 = scmp.lt.s32.totalorder (!%p174_p3), %s2847_s12, 1 }
   0x7   : > { %177 = sbr.rel (%p174_p3) target bundleno = 361 (0x169), region = 32 }
   0xc   : > { %v2254_v0 = vld [vmem:[%s3244_s1 + $0x2] sm:$0x3]  ;;  %vm336_vm0 = vcmask 1041408   ;;  %v251_v2 = vld [vmem:[%s3244_s1] sm:$0x3]  ;;  %s3252_s12 = smov (!%p210_p4, %s2847_s12), 1 }
   0xd   : > { %2724 = vmatprep.subr.msk.bf16.mxu1 %vm336_vm0, %v2254_v0  ;;  %2723 = vmatprep.subr.msk.bf16.mxu0 %vm336_vm0, %v2254_v0  ;;  %v338_v1 = vsel %vm336_vm0, %v2254_v0, 0  ;;  %v2287_v3 = vld [vmem:[%s3244_s1 + $0x4] sm:$0x3]  ;;  %s2733_s22 = smul.u32 320, %s3252_s12  ;;  %vm311_vm1 = vcmask 31744   ;;  %v494_v10 = vsel %vm336_vm0, %v251_v2, 0 }
   0xe   : > { %2722 = vmatpush3.bf16.msra.mxu1 %v338_v1  ;;  %2560 = vmatpush3.bf16.msra.mxu0 %v338_v1  ;;  %v741_v7 = vsel %vm336_vm0, %v2287_v3, 0  ;;  %v2321_v8 = vld [vmem:[%s3244_s1 + $0x6] sm:$0x3]  ;;  %v2354_v11 = vld [vmem:[%s3244_s1 + $0x8] sm:$0x3]  ;;  %s2477_s17 = sshll.u32 %s3252_s12, 5 }
   0xf   : > { %2725 = vmatprep.subr.msk.bf16.mxu1 %vm336_vm0, %v251_v2  ;;  %2726 = vmatprep.subr.msk.bf16.mxu0 %vm336_vm0, %v2287_v3  ;;  %s2915_s25 = scalar_lea.vmem %s3243_s0, %s2733_s22  ;;  %vm647_vm2 = vsmask.f32 7424  ;;  %v1107_v26 = vsel %vm336_vm0, %v2354_v11, 0  ;;  %v2957_v40 = vld [vmem:[%s3244_s1 + $0xa] sm:$0x3]  ;;  %v924_v42 = vsel %vm336_vm0, %v2321_v8, 0  ;;  %s3196_s20 = scalar_lea.vmem %s3246_s3, %s2477_s17 }
  0x10   : > { %v2758_v4 = vld [vmem:[%s2915_s25 + $0x50] sm:$0xff]   ;;  %v2760_v6 = vld [vmem:[%s2915_s25 + $0x58] sm:$0xff]   ;;  %v2762_v12 = vld [vmem:[%s2915_s25 + $0x60] sm:$0xff]   ;;  %vm2108_vm3 = vcmask 27648  }
  0x11   : > { %v2759_v5 = vld [vmem:[%s2915_s25 + $0x70] sm:$0xff]   ;;  %2561 = vmatprep.mubr.msk.bf16.mxu0 %vm311_vm1, %v2758_v4  ;;  %v2761_v9 = vld [vmem:[%s2915_s25 + $0x78] sm:$0xff]   ;;  %v2763_v13 = vld [vmem:[%s2915_s25 + $0x80] sm:$0xff]  }
  0x12   : > { %2569 = vmatprep.mubr.msk.bf16.mxu1 %vm311_vm1, %v2759_v5  ;;  %2562 = vmatmul.mubr.msk.bf16.vlgmr.msra.gmra.mxu0 %vm311_vm1, %v2760_v6  ;;  %v2764_v14 = vld [vmem:[%s2915_s25 + $0x68] sm:$0xff]   ;;  %v2766_v16 = vld [vmem:[%s2915_s25] sm:$0xff]   ;;  %v2770_v23 = vld [vmem:[%s2915_s25 + $0x10] sm:$0xff]  }
  0x13   : > { %2570 = vmatmul.mubr.msk.bf16.vlgmr.msra.gmra.mxu1 %vm311_vm1, %v2761_v9  ;;  %2596 = vmatpush3.bf16.msra.mxu0 %v741_v7  ;;  %v2765_v15 = vld [vmem:[%s2915_s25 + $0x88] sm:$0xff]   ;;  %v2767_v17 = vld [vmem:[%s2915_s25] sm:$0xff]   ;;  %v2772_v27 = vld [vmem:[%s2915_s25 + $0x18] sm:$0xff]   ;;  %v664_v29 = vshll.u32 %v2770_v23, 16  ;;  %v668_v30 = vshrl.u32 %v2770_v23, 16 }
  0x14   : > { %2578 = vmatpush3.bf16.msra.mxu1 %v494_v10  ;;  %2565 = vmatprep.mubr.msk.bf16.mxu0 %vm311_vm1, %v2762_v12  ;;  %v2768_v18 = vld [vmem:[%s2915_s25 + $0x8] sm:$0xff]   ;;  %v649_v19 = vshrl.u32 %v2767_v17, 16  ;;  %v651_v20 = vshll.u32 %v2767_v17, 16  ;;  %v2771_v33 = vld [vmem:[%s2915_s25 + $0x10] sm:$0xff]   ;;  %v672_v34 = vshll.u32 %v2772_v27, 16  ;;  %v2774_v36 = vld [vmem:[%s2915_s25 + $0x20] sm:$0xff]  }
  0x15   : > { %2573 = vmatprep.mubr.msk.bf16.mxu1 %vm311_vm1, %v2763_v13  ;;  %2727 = vmatprep.subr.msk.bf16.mxu1 %vm336_vm0, %v2321_v8  ;;  %v656_v21 = vshll.u32 %v2768_v18, 16  ;;  %v660_v22 = vshrl.u32 %v2768_v18, 16  ;;  %v2769_v28 = vld [vmem:[%s2915_s25 + $0x8] sm:$0xff]   ;;  %v666_v35 = vrot.slane %v664_v29, 1  ;;  %v676_v39 = vshrl.u32 %v2772_v27, 16  ;;  %v2778_v52 = vld [vmem:[%s2915_s25 + $0x30] sm:$0xff]  }
  0x16   : > { %2728 = vmatprep.subr.msk.bf16.mxu0 %vm336_vm0, %v2354_v11  ;;  %v653_v24 = vrot.slane %v651_v20, 1  ;;  %v674_v38 = vrot.slane %v672_v34, 1  ;;  %v680_v44 = vshll.u32 %v2774_v36, 16  ;;  %v2406_v45 = vld [vmem:[%s3244_s1 + $0xc] sm:$0x3]  ;;  %v684_v47 = vshrl.u32 %v2774_v36, 16 }
  0x17   : > { %v658_v25 = vrot.slane %v656_v21, 1  ;;  %v670_v43 = vor.u32 %v668_v30, %v666_v35  ;;  %v2776_v46 = vld [vmem:[%s2915_s25 + $0x28] sm:$0xff]   ;;  %v696_v55 = vshll.u32 %v2778_v52, 16  ;;  %v2780_v56 = vld [vmem:[%s2915_s25 + $0x38] sm:$0xff]   ;;  %v2775_v60 = vld [vmem:[%s2915_s25 + $0x20] sm:$0xff]   ;;  %v700_v62 = vshrl.u32 %v2778_v52, 16 }
  0x18   : > { %v654_v31 = vor.u32 %v653_v24, %v649_v19  ;;  %v678_v49 = vor.u32 %v676_v39, %v674_v38  ;;  %v682_v50 = vrot.slane %v680_v44, 1  ;;  %v688_v51 = vshll.u32 %v2776_v46, 16  ;;  %v2773_v57 = vld [vmem:[%s2915_s25 + $0x18] sm:$0xff]   ;;  %v2782_v0 = vld [vmem:[%s2915_s25 + $0x40] ss:$0 sps:$4 sm:$0x11]  }
  0x19   : > { %v662_v32 = vor.u32 %v660_v22, %v658_v25  ;;  %v675_v48 = vsel %vm647_vm2, %v670_v43, %v674_v38  ;;  %v692_v59 = vshrl.u32 %v2776_v46, 16  ;;  %v704_v63 = vshll.u32 %v2780_v56, 16  ;;  %v2777_v5 = vld [vmem:[%s2915_s25 + $0x28] sm:$0xff]   ;;  %v2779_v9 = vld [vmem:[%s2915_s25 + $0x30] sm:$0xff]   ;;  %v2781_v13 = vld [vmem:[%s2915_s25 + $0x38] sm:$0xff]  }
  0x1a   : > { %2566 = vmatmul.mubr.msk.bf16.gmra.mxu0 %vm311_vm1, %v2764_v14  ;;  %v659_v37 = vsel %vm647_vm2, %v654_v31, %v658_v25  ;;  %v686_v53 = vor.u32 %v684_v47, %v682_v50  ;;  %v690_v54 = vrot.slane %v688_v51, 1  ;;  %v683_v58 = vsel %vm647_vm2, %v678_v49, %v682_v50  ;;  %v2786_v17 = vld [vmem:[%s2915_s25 + $0xf8] sm:$0xff]   ;;  %v2785_v18 = vld [vmem:[%s2915_s25 + $0xa8] sm:$0xff]   ;;  %v2787_v20 = vld [vmem:[%s2915_s25 + $0xb0] sm:$0xff]  }
  0x1b   : > { %2574 = vmatmul.mubr.msk.bf16.gmra.mxu1 %vm311_vm1, %v2765_v15  ;;  %2597 = vmatprep.mubr.msk.bf16.mxu0 %vm311_vm1, %v659_v37  ;;  %v667_v41 = vsel %vm647_vm2, %v662_v32, %v666_v35  ;;  %v698_v1 = vrot.slane %v696_v55, 1  ;;  %v706_v4 = vrot.slane %v704_v63, 1  ;;  %v708_v7 = vshrl.u32 %v2780_v56, 16  ;;  %v2784_v15 = vld [vmem:[%s2915_s25 + $0xf0] sm:$0xff]   ;;  %v2788_v22 = vld [vmem:[%s2915_s25 + $0x100] sm:$0xff]   ;;  %v2789_v25 = vld [vmem:[%s2915_s25 + $0xb8] sm:$0xff]  }
  0x1c   : > { %2579 = vmatprep.mubr.msk.bf16.mxu1 %vm311_vm1, %v2766_v16  ;;  %v691_v61 = vsel %vm647_vm2, %v686_v53, %v690_v54  ;;  %v694_v2 = vor.u32 %v692_v59, %v690_v54  ;;  %v712_v8 = vshll.u32 %v2782_v0, 16  ;;  %v2783_v16 = vld [vmem:[%s2915_s25 + $0xa0] sm:$0xff]   ;;  %v1543_v19 = vsel %vm336_vm0, %v2406_v45, 0  ;;  %v2439_v23 = vld [vmem:[%s3244_s1 + $0xe] sm:$0x3]  ;;  %v2792_v27 = vld [vmem:[%s2915_s25 + $0x110] sm:$0xff]  }
  0x1d   : > { %v702_v3 = vor.u32 %v700_v62, %v698_v1  ;;  %v710_v11 = vor.u32 %v708_v7, %v706_v4  ;;  %v1361_v21 = vsel %vm336_vm0, %v2957_v40, 0  ;;  %v2456_v24 = vld [vmem:[%s3244_s1 + $0x10] sm:$0x3]  ;;  %v2799_v29 = vld [vmem:[%s2915_s25 + $0xa0] sm:$0xff]   ;;  %v2800_v30 = vld [vmem:[%s2915_s25 + $0xa8] sm:$0xff]   ;;  %v1725_v62 = vsel %vm336_vm0, %v2439_v23, 0 }
  0x1e   : > { %v699_v6 = vsel %vm647_vm2, %v694_v2, %v698_v1  ;;  %v714_v12 = vrot.slane %v712_v8, 1  ;;  %v1271_v31 = vshll.u32 %v2799_v29, 16  ;;  %v2793_v32 = vld [vmem:[%s2915_s25 + $0xc8] sm:$0xff]   ;;  %v2796_v34 = vld [vmem:[%s2915_s25 + $0x120] sm:$0xff]   ;;  %v2795_v35 = vld [vmem:[%s2915_s25 + $0xd0] sm:$0xff]   ;;  %v1269_v36 = vshrl.u32 %v2799_v29, 16 }
  0x1f   : > { %v707_v10 = vsel %vm647_vm2, %v702_v3, %v706_v4  ;;  %v1276_v38 = vshll.u32 %v2800_v30, 16  ;;  %v2802_v39 = vld [vmem:[%s2915_s25 + $0xb0] sm:$0xff]   ;;  %v2804_v43 = vld [vmem:[%s2915_s25 + $0xb8] sm:$0xff]   ;;  %v2798_v44 = vld [vmem:[%s2915_s25 + $0x128] sm:$0xff]   ;;  %v1280_v47 = vshrl.u32 %v2800_v30, 16 }
  0x20   : > { %v715_v14 = vsel %vm647_vm2, %v710_v11, %v714_v12  ;;  %v1273_v37 = vrot.slane %v1271_v31, 1  ;;  %v1284_v46 = vshll.u32 %v2802_v39, 16  ;;  %v1288_v49 = vshrl.u32 %v2802_v39, 16  ;;  %v2806_v52 = vld [vmem:[%s2915_s25 + $0xc0] sm:$0xff]   ;;  %v2808_v56 = vld [vmem:[%s2915_s25 + $0xc8] sm:$0xff]   ;;  %v2805_v0 = vld [vmem:[%s2915_s25 + $0x18] sm:$0xff]  }
  0x21   : > { %v1292_v50 = vshll.u32 %v2804_v43, 16  ;;  %v1304_v1 = vshrl.u32 %v2806_v52, 16  ;;  %v1308_v2 = vshll.u32 %v2808_v56, 16  ;;  %v2810_v4 = vld [vmem:[%s2915_s25 + $0xd0] sm:$0xff]   ;;  %v2812_v8 = vld [vmem:[%s2915_s25 + $0xd8] sm:$0xff]   ;;  %v1312_v11 = vshrl.u32 %v2808_v56, 16 }
  0x22   : > { %2598 = vmatmul.mubr.msk.bf16.vlgmr.msra.gmra.mxu0 %vm311_vm1, %v667_v41  ;;  %v1274_v41 = vor.u32 %v1273_v37, %v1269_v36  ;;  %v1286_v51 = vrot.slane %v1284_v46, 1  ;;  %v1316_v12 = vshll.u32 %v2810_v4, 16  ;;  %v2822_v39 = vld [vmem:[%s2915_s25 + $0x20] sm:$0xff]  }
  0x23   : > { %2580 = vmatmul.mubr.msk.bf16.vlgmr.msra.gmra.mxu1 %vm311_vm1, %v2769_v28  ;;  %2632 = vmatpush3.bf16.msra.mxu0 %v1107_v26  ;;  %v2790_v26 = vld [vmem:[%s2915_s25 + $0x108] sm:$0xff]   ;;  %v2791_v28 = vld [vmem:[%s2915_s25 + $0xc0] sm:$0xff]   ;;  %v1294_v55 = vrot.slane %v1292_v50, 1  ;;  %v1310_v7 = vrot.slane %v1308_v2, 1 }
  0x24   : > { %2614 = vmatpush3.bf16.msra.mxu1 %v924_v42  ;;  %2583 = vmatprep.mubr.msk.bf16.mxu1 %vm311_vm1, %v2771_v33  ;;  %v2794_v33 = vld [vmem:[%s2915_s25 + $0x118] sm:$0xff]   ;;  %v1278_v42 = vrot.slane %v1276_v38, 1  ;;  %v1290_v54 = vor.u32 %v1288_v49, %v1286_v51  ;;  %v2824_v49 = vld [vmem:[%s2915_s25 + $0x28] sm:$0xff]  }
  0x25   : > { %2601 = vmatprep.mubr.msk.bf16.mxu0 %vm311_vm1, %v675_v48  ;;  %2729 = vmatprep.subr.msk.bf16.mxu1 %vm336_vm0, %v2957_v40  ;;  %v2797_v40 = vld [vmem:[%s2915_s25 + $0xd8] sm:$0xff]  }
  0x26   : > { %2730 = vmatprep.subr.msk.bf16.mxu0 %vm336_vm0, %v2406_v45  ;;  %v2801_v45 = vld [vmem:[%s2915_s25 + $0x8] sm:$0xff]   ;;  %v1279_v48 = vsel %vm647_vm2, %v1274_v41, %v1278_v42  ;;  %v1282_v53 = vor.u32 %v1280_v47, %v1278_v42  ;;  %v1295_v63 = vsel %vm647_vm2, %v1290_v54, %v1294_v55  ;;  %v1910_v47 = vshll.u32 %v2822_v39, 16 }
  0x27   : > { %v1918_v54 = vshll.u32 %v2824_v49, 16 }
  0x28   : > { %v1287_v59 = vsel %vm647_vm2, %v1282_v53, %v1286_v51  ;;  %v2826_v53 = vld [vmem:[%s2915_s25 + $0x30] sm:$0xff]  }
  0x2a   : > { %2602 = vmatmul.mubr.msk.bf16.gmra.mxu0 %vm311_vm1, %v683_v58  ;;  %v1300_v58 = vshll.u32 %v2806_v52, 16  ;;  %v1912_v52 = vrot.slane %v1910_v47, 1 }
  0x2b   : > { %2584 = vmatmul.mubr.msk.bf16.gmra.mxu1 %vm311_vm1, %v2773_v57  ;;  %2605 = vmatprep.mubr.msk.bf16.mxu0 %vm311_vm1, %v691_v61  ;;  %v2803_v57 = vld [vmem:[%s2915_s25 + $0x10] sm:$0xff]   ;;  %v1296_v61 = vshrl.u32 %v2804_v43, 16 }
  0x2c   : > { %2587 = vmatprep.mubr.msk.bf16.mxu1 %vm311_vm1, %v2775_v60  ;;  %v1979_v60 = vsel %vm336_vm0, %v2456_v24, 0  ;;  %v1302_v3 = vrot.slane %v1300_v58, 1  ;;  %v2821_v58 = vld [vmem:[%s2915_s25 + $0x68] sm:$0xff]  }
  0x32   : > { %2606 = vmatmul.mubr.msk.bf16.gmra.mxu0 %vm311_vm1, %v699_v6  ;;  %v1306_v6 = vor.u32 %v1304_v1, %v1302_v3 }
  0x33   : > { %2588 = vmatmul.mubr.msk.bf16.gmra.mxu1 %vm311_vm1, %v2777_v5  ;;  %2609 = vmatprep.mubr.msk.bf16.mxu0 %vm311_vm1, %v707_v10  ;;  %v1298_v5 = vor.u32 %v1296_v61, %v1294_v55  ;;  %v2809_v10 = vld [vmem:[%s2915_s25 + $0x28] sm:$0xff]   ;;  %v2819_v55 = vld [vmem:[%s2915_s25 + $0x60] sm:$0xff]   ;;  %v1926_v61 = vshll.u32 %v2826_v53, 16 }
  0x34   : > { %2591 = vmatprep.mubr.msk.bf16.mxu1 %vm311_vm1, %v2779_v9  ;;  %v2807_v9 = vld [vmem:[%s2915_s25 + $0x20] sm:$0xff]  }
  0x35   : > { %v1928_v2 = vrot.slane %v1926_v61, 1 }
  0x3a   : > { %2610 = vmatmul.mubr.msk.bf16.gmra.mxu0 %vm311_vm1, %v715_v14  ;;  %v2817_v14 = vld [vmem:[%s2915_s25 + $0x8] sm:$0xff]  }
  0x3b   : > { %2592 = vmatmul.mubr.msk.bf16.gmra.mxu1 %vm311_vm1, %v2781_v13  ;;  %2633 = vmatprep.mubr.msk.bf16.mxu0 %vm311_vm1, %v2784_v15  ;;  %v1303_v13 = vsel %vm647_vm2, %v1298_v5, %v1302_v3  ;;  %v1311_v15 = vsel %vm647_vm2, %v1306_v6, %v1310_v7  ;;  %v1887_v30 = vshrl.u32 %v2817_v14, 16  ;;  %v2830_v3 = vld [vmem:[%s2915_s25 + $0x40] sm:$0xff]   ;;  %v2823_v5 = vld [vmem:[%s2915_s25 + $0x70] sm:$0xff]  }
  0x3c   : > { %2615 = vmatprep.mubr.msk.bf16.mxu1 %vm311_vm1, %v2783_v16  ;;  %v1320_v16 = vshrl.u32 %v2810_v4, 16 }
  0x42   : > { %2634 = vmatmul.mubr.msk.bf16.vlgmr.msra.gmra.mxu0 %vm311_vm1, %v2786_v17  ;;  %v1324_v17 = vshll.u32 %v2812_v8, 16 }
  0x43   : > { %2616 = vmatmul.mubr.msk.bf16.vlgmr.msra.gmra.mxu1 %vm311_vm1, %v2785_v18  ;;  %2668 = vmatpush3.bf16.msra.mxu0 %v1543_v19  ;;  %v1314_v18 = vor.u32 %v1312_v11, %v1310_v7  ;;  %v1318_v19 = vrot.slane %v1316_v12, 1  ;;  %v1930_v7 = vshrl.u32 %v2826_v53, 16  ;;  %v1942_v11 = vshll.u32 %v2830_v3, 16 }
  0x44   : > { %2650 = vmatpush3.bf16.msra.mxu1 %v1361_v21  ;;  %2619 = vmatprep.mubr.msk.bf16.mxu1 %vm311_vm1, %v2787_v20  ;;  %v2814_v20 = vld [vmem:[%s2915_s25 + $0xe0] ss:$0 sps:$4 sm:$0x11]   ;;  %v2818_v21 = vld [vmem:[%s2915_s25 + $0x10] sm:$0xff]  }
  0x45   : > { %2637 = vmatprep.mubr.msk.bf16.mxu0 %vm311_vm1, %v2788_v22  ;;  %2731 = vmatprep.subr.msk.bf16.mxu1 %vm336_vm0, %v2439_v23  ;;  %v1889_v22 = vshll.u32 %v2817_v14, 16  ;;  %v1322_v23 = vor.u32 %v1320_v16, %v1318_v19  ;;  %v1332_v29 = vshll.u32 %v2814_v20, 16  ;;  %v1898_v42 = vshrl.u32 %v2818_v21, 16  ;;  %v2832_v14 = vld [vmem:[%s2915_s25 + $0x48] ss:$0 sps:$4 sm:$0x11]  }
  0x46   : > { %2732 = vmatprep.subr.msk.bf16.mxu0 %vm336_vm0, %v2456_v24  ;;  %v1326_v24 = vrot.slane %v1324_v17, 1  ;;  %v1944_v16 = vrot.slane %v1942_v11, 1  ;;  %v2827_v17 = vld [vmem:[%s2915_s25 + $0x80] sm:$0xff]   ;;  %v1950_v20 = vshll.u32 %v2832_v14, 16 }
  0x47   : > { %v1891_v31 = vrot.slane %v1889_v22, 1  ;;  %v1334_v36 = vrot.slane %v1332_v29, 1 }
  0x49   : > { %v1892_v37 = vor.u32 %v1891_v31, %v1887_v30 }
  0x4a   : > { %2638 = vmatmul.mubr.msk.bf16.gmra.mxu0 %vm311_vm1, %v2790_v26  ;;  %v1319_v26 = vsel %vm647_vm2, %v1314_v18, %v1318_v19  ;;  %v1946_v19 = vshrl.u32 %v2830_v3, 16 }
  0x4b   : > { %2620 = vmatmul.mubr.msk.bf16.gmra.mxu1 %vm311_vm1, %v2789_v25  ;;  %2641 = vmatprep.mubr.msk.bf16.mxu0 %vm311_vm1, %v2792_v27  ;;  %v2811_v25 = vld [vmem:[%s2915_s25 + $0x30] sm:$0xff]   ;;  %v2813_v27 = vld [vmem:[%s2915_s25 + $0x38] sm:$0xff]  }
  0x4c   : > { %2623 = vmatprep.mubr.msk.bf16.mxu1 %vm311_vm1, %v2791_v28  ;;  %v1328_v28 = vshrl.u32 %v2812_v8, 16  ;;  %v2825_v8 = vld [vmem:[%s2915_s25 + $0x78] sm:$0xff]  }
  0x52   : > { %2642 = vmatmul.mubr.msk.bf16.gmra.mxu0 %vm311_vm1, %v2794_v33  ;;  %v1327_v33 = vsel %vm647_vm2, %v1322_v23, %v1326_v24  ;;  %v1948_v23 = vor.u32 %v1946_v19, %v1944_v16 }
  0x53   : > { %2624 = vmatmul.mubr.msk.bf16.gmra.mxu1 %vm311_vm1, %v2793_v32  ;;  %2645 = vmatprep.mubr.msk.bf16.mxu0 %vm311_vm1, %v2796_v34  ;;  %v1894_v32 = vshll.u32 %v2818_v21, 16  ;;  %v2820_v34 = vld [vmem:[%s2915_s25 + $0x18] sm:$0xff]   ;;  %v2829_v21 = vld [vmem:[%s2915_s25 + $0x88] sm:$0xff]  }
  0x54   : > { %2627 = vmatprep.mubr.msk.bf16.mxu1 %vm311_vm1, %v2795_v35  ;;  %v1330_v35 = vor.u32 %v1328_v28, %v1326_v24  ;;  %v1902_v41 = vshll.u32 %v2820_v34, 16  ;;  %v1906_v46 = vshrl.u32 %v2820_v34, 16  ;;  %v1952_v24 = vrot.slane %v1950_v20, 1 }
  0x55   : > { %v1896_v38 = vrot.slane %v1894_v32, 1 }
  0x56   : > { %v1335_v43 = vsel %vm647_vm2, %v1330_v35, %v1334_v36 }
  0x57   : > { %v1900_v50 = vor.u32 %v1898_v42, %v1896_v38 }
  0x5a   : > { %2646 = vmatmul.mubr.msk.bf16.gmra.mxu0 %vm311_vm1, %v2798_v44  ;;  %v2816_v44 = vld [vmem:[%s2915_s25 + $0x58] sm:$0xff]  }
  0x5b   : > { %2628 = vmatmul.mubr.msk.bf16.gmra.mxu1 %vm311_vm1, %v2797_v40  ;;  %2669 = vmatprep.mubr.msk.bf16.mxu0 %vm311_vm1, %v2801_v45  ;;  %v2815_v40 = vld [vmem:[%s2915_s25 + $0x40] sm:$0xff]   ;;  %v1897_v45 = vsel %vm647_vm2, %v1892_v37, %v1896_v38 }
  0x5c   : > { %2651 = vmatprep.mubr.msk.bf16.mxu1 %vm311_vm1, %v1279_v48  ;;  %v1904_v48 = vrot.slane %v1902_v41, 1 }
  0x5e   : > { %v1908_v51 = vor.u32 %v1906_v46, %v1904_v48  ;;  %v1905_v56 = vsel %vm647_vm2, %v1900_v50, %v1904_v48 }
  0x62   : > { %2670 = vmatmul.mubr.msk.bf16.vlgmr.msra.gmra.mxu0 %vm311_vm1, %v2803_v57  ;;  %v1914_v57 = vshrl.u32 %v2822_v39, 16 }
  0x63   : > { %2652 = vmatmul.mubr.msk.bf16.vlgmr.msra.gmra.mxu1 %vm311_vm1, %v1287_v59  ;;  %2704 = vmatpush3.bf16.msra.mxu0 %v1979_v60  ;;  %v1913_v59 = vsel %vm647_vm2, %v1908_v51, %v1912_v52  ;;  %v1922_v60 = vshrl.u32 %v2824_v49, 16 }
  0x64   : > { %2686 = vmatpush3.bf16.msra.mxu1 %v1725_v62  ;;  %2655 = vmatprep.mubr.msk.bf16.mxu1 %vm311_vm1, %v1295_v63  ;;  %v1920_v62 = vrot.slane %v1918_v54, 1  ;;  %v2828_v63 = vld [vmem:[%s2915_s25 + $0x38] sm:$0xff]  }
  0x65   : > { %2673 = vmatprep.mubr.msk.bf16.mxu0 %vm311_vm1, %v2805_v0  ;;  %v1916_v0 = vor.u32 %v1914_v57, %v1912_v52  ;;  %v1934_v4 = vshll.u32 %v2828_v63, 16 }
  0x66   : > { %v1924_v1 = vor.u32 %v1922_v60, %v1920_v62 }
  0x67   : > { %v1921_v6 = vsel %vm647_vm2, %v1916_v0, %v1920_v62  ;;  %v1936_v12 = vrot.slane %v1934_v4, 1 }
  0x6a   : > { %2674 = vmatmul.mubr.msk.bf16.gmra.mxu0 %vm311_vm1, %v2807_v9  ;;  %v1929_v9 = vsel %vm647_vm2, %v1924_v1, %v1928_v2 }
  0x6b   : > { %2656 = vmatmul.mubr.msk.bf16.gmra.mxu1 %vm311_vm1, %v1303_v13  ;;  %2677 = vmatprep.mubr.msk.bf16.mxu0 %vm311_vm1, %v2809_v10  ;;  %v1938_v10 = vshrl.u32 %v2828_v63, 16  ;;  %v1932_v13 = vor.u32 %v1930_v7, %v1928_v2 }
  0x6c   : > { %2659 = vmatprep.mubr.msk.bf16.mxu1 %vm311_vm1, %v1311_v15 }
  0x6d   : > { %v1940_v15 = vor.u32 %v1938_v10, %v1936_v12  ;;  %v1937_v18 = vsel %vm647_vm2, %v1932_v13, %v1936_v12 }
  0x6f   : > { %v1945_v22 = vsel %vm647_vm2, %v1940_v15, %v1944_v16 }
  0x72   : > { %2678 = vmatmul.mubr.msk.bf16.gmra.mxu0 %vm311_vm1, %v2811_v25  ;;  %v2831_v25 = vld [vmem:[%s2915_s25 + $0x90] sm:$0xff]  }
  0x73   : > { %2660 = vmatmul.mubr.msk.bf16.gmra.mxu1 %vm311_vm1, %v1319_v26  ;;  %2681 = vmatprep.mubr.msk.bf16.mxu0 %vm311_vm1, %v2813_v27  ;;  %v1953_v26 = vsel %vm647_vm2, %v1948_v23, %v1952_v24 }
  0x74   : > { %2663 = vmatprep.mubr.msk.bf16.mxu1 %vm311_vm1, %v1327_v33 }
  0x7a   : > { %2682 = vmatmul.mubr.msk.bf16.gmra.mxu0 %vm311_vm1, %v2815_v40 }
  0x7b   : > { %2664 = vmatmul.mubr.msk.bf16.gmra.mxu1 %vm311_vm1, %v1335_v43  ;;  %2705 = vmatprep.mubr.msk.bf16.mxu0 %vm311_vm1, %v1897_v45 }
  0x7c   : > { %2687 = vmatprep.mubr.msk.bf16.mxu1 %vm311_vm1, %v2816_v44 }
  0x82   : > { %2706 = vmatmul.mubr.msk.bf16.vlgmr.msra.gmra.mxu0 %vm311_vm1, %v1905_v56 }
  0x83   : > { %2688 = vmatmul.mubr.msk.bf16.vlgmr.msra.gmra.mxu1 %vm311_vm1, %v2819_v55  ;;  %2709 = vmatprep.mubr.msk.bf16.mxu0 %vm311_vm1, %v1913_v59 }
  0x84   : > { %2691 = vmatprep.mubr.msk.bf16.mxu1 %vm311_vm1, %v2821_v58 }
  0x8a   : > { %2710 = vmatmul.mubr.msk.bf16.gmra.mxu0 %vm311_vm1, %v1921_v6 }
  0x8b   : > { %2692 = vmatmul.mubr.msk.bf16.gmra.mxu1 %vm311_vm1, %v2823_v5  ;;  %2713 = vmatprep.mubr.msk.bf16.mxu0 %vm311_vm1, %v1929_v9 }
  0x8c   : > { %2695 = vmatprep.mubr.msk.bf16.mxu1 %vm311_vm1, %v2825_v8 }
  0x92   : > { %2714 = vmatmul.mubr.msk.bf16.gmra.mxu0 %vm311_vm1, %v1937_v18 }
  0x93   : > { %2696 = vmatmul.mubr.msk.bf16.gmra.mxu1 %vm311_vm1, %v2827_v17  ;;  %2717 = vmatprep.mubr.msk.bf16.mxu0 %vm311_vm1, %v1945_v22 }
  0x94   : > { %2699 = vmatprep.mubr.msk.bf16.mxu1 %vm311_vm1, %v2829_v21 }
  0x9a   : > { %2718 = vmatmul.mubr.msk.bf16.gmra.mxu0 %vm311_vm1, %v1953_v26 }
  0x9b   : > { %2700 = vmatmul.mubr.msk.bf16.gmra.mxu1 %vm311_vm1, %v2831_v25 }
  0xd2   : > { %v2563_v27 = vpop.f32.mrf.mxu0 }
  0xd3   : > { %v2571_v28 = vpop.f32.mrf.mxu1 }
  0xd4   : > { %v374_v29 = vpop.f32.mrf.mxu0 }
  0xd5   : > { %v402_v30 = vpop.f32.mrf.mxu1 }
  0xd6   : > { %v2564_v31 = vpop.f32.mrf.mxu0 }
  0xd7   : > { %v2572_v32 = vpop.f32.mrf.mxu1 }
  0xd8   : > { %v377_v33 = vpop.f32.mrf.mxu0 }
  0xd9   : > { %v405_v34 = vpop.f32.mrf.mxu1 }
  0xda   : > { %v2567_v35 = vpop.f32.mrf.mxu0 }
  0xdb   : > { %v2575_v36 = vpop.f32.mrf.mxu1 }
  0xdc   : > { %v388_v37 = vpop.f32.mrf.mxu0 }
  0xdd   : > { %v416_v38 = vpop.f32.mrf.mxu1 }
  0xde   : > { %v2568_v39 = vpop.f32.mrf.mxu0 }
  0xdf   : > { %v2576_v40 = vpop.f32.mrf.mxu1 }
  0xe0   : > { %v391_v41 = vpop.f32.mrf.mxu0 }
  0xe1   : > { %v419_v42 = vpop.f32.mrf.mxu1 }
  0xe2   : > { %v2599_v43 = vpop.f32.mrf.mxu0 }
  0xe3   : > { %v2581_v44 = vpop.f32.mrf.mxu1 }
  0xe4   : > { %v538_v45 = vadd.f32 %v2581_v44, %v2563_v27  ;;  %v777_v46 = vpop.f32.mrf.mxu0 }
  0xe5   : > { %v530_v47 = vpop.f32.mrf.mxu1 }
  0xe6   : > { %v3124_v48 = vadd.f32 %v2599_v43, %v538_v45  ;;  %v531_v49 = vadd.f32 %v530_v47, %v374_v29  ;;  %v2600_v50 = vpop.f32.mrf.mxu0 }
  0xe7   : > { %v2582_v51 = vpop.f32.mrf.mxu1 }
  0xe8   : > { %v3126_v52 = vadd.f32 %v777_v46, %v531_v49  ;;  %v780_v53 = vpop.f32.mrf.mxu0 }
  0xe9   : > { %v533_v54 = vpop.f32.mrf.mxu1 }
  0xea   : > { %v2603_v55 = vpop.f32.mrf.mxu0 }
  0xeb   : > { %v2585_v56 = vpop.f32.mrf.mxu1 }
  0xec   : > { %v552_v57 = vadd.f32 %v2585_v56, %v2567_v35  ;;  %v791_v58 = vpop.f32.mrf.mxu0 }
  0xed   : > { %v544_v59 = vpop.f32.mrf.mxu1 }
  0xee   : > { %v3128_v60 = vadd.f32 %v2603_v55, %v552_v57  ;;  %v545_v61 = vadd.f32 %v544_v59, %v388_v37  ;;  %v2604_v62 = vpop.f32.mrf.mxu0 }
  0xef   : > { %v2586_v63 = vpop.f32.mrf.mxu1 }
  0xf0   : > { %v3130_v0 = vadd.f32 %v791_v58, %v545_v61  ;;  %v794_v1 = vpop.f32.mrf.mxu0 }
  0xf1   : > { %v547_v2 = vpop.f32.mrf.mxu1 }
  0xf2   : > { %v2607_v3 = vpop.f32.mrf.mxu0 }
  0xf3   : > { %v2589_v4 = vpop.f32.mrf.mxu1 }
  0xf4   : > { %v566_v5 = vadd.f32 %v2589_v4, %v2571_v28  ;;  %v805_v6 = vpop.f32.mrf.mxu0 }
  0xf5   : > { %v558_v7 = vpop.f32.mrf.mxu1 }
  0xf6   : > { %v3132_v8 = vadd.f32 %v2607_v3, %v566_v5  ;;  %v559_v9 = vadd.f32 %v558_v7, %v402_v30  ;;  %v2608_v10 = vpop.f32.mrf.mxu0 }
  0xf7   : > { %v2590_v11 = vpop.f32.mrf.mxu1 }
  0xf8   : > { %v3134_v12 = vadd.f32 %v805_v6, %v559_v9  ;;  %v808_v13 = vpop.f32.mrf.mxu0 }
  0xf9   : > { %v561_v14 = vpop.f32.mrf.mxu1 }
  0xfa   : > { %v2611_v15 = vpop.f32.mrf.mxu0 }
  0xfb   : > { %v2593_v16 = vpop.f32.mrf.mxu1 }
  0xfc   : > { %v580_v17 = vadd.f32 %v2593_v16, %v2575_v36  ;;  %v819_v18 = vpop.f32.mrf.mxu0 }
  0xfd   : > { %v572_v19 = vpop.f32.mrf.mxu1 }
  0xfe   : > { %v3136_v20 = vadd.f32 %v2611_v15, %v580_v17  ;;  %v573_v21 = vadd.f32 %v572_v19, %v416_v38  ;;  %v2612_v22 = vpop.f32.mrf.mxu0 }
  0xff   : > { %v2594_v23 = vpop.f32.mrf.mxu1 }
 0x100   : > { %v3138_v24 = vadd.f32 %v819_v18, %v573_v21  ;;  %v822_v25 = vpop.f32.mrf.mxu0 }
 0x101   : > { %v575_v26 = vpop.f32.mrf.mxu1 }
 0x102   : > { %v2635_v27 = vpop.f32.mrf.mxu0 }
 0x103   : > { %v2617_v28 = vpop.f32.mrf.mxu1 }
 0x104   : > { %v1143_v29 = vpop.f32.mrf.mxu0  ;;  %v1016_v25 = vadd.f32 %v2617_v28, %v3124_v48 }
 0x105   : > { %v960_v30 = vpop.f32.mrf.mxu1 }
 0x106   : > { %v2636_v31 = vpop.f32.mrf.mxu0 }
 0x107   : > { %v2618_v32 = vpop.f32.mrf.mxu1 }
 0x108   : > { %v1146_v33 = vpop.f32.mrf.mxu0  ;;  %v1015_v32 = vadd.f32 %v960_v30, %v3126_v52 }
 0x109   : > { %v963_v34 = vpop.f32.mrf.mxu1 }
 0x10a   : > { %v3140_v35 = vpop.f32.mrf.mxu0 }
 0x10b   : > { %v2621_v36 = vpop.f32.mrf.mxu1 }
 0x10c   : > { %v3142_v37 = vpop.f32.mrf.mxu0 }
 0x10d   : > { %v974_v38 = vpop.f32.mrf.mxu1 }
 0x10e   : > { %v2640_v39 = vpop.f32.mrf.mxu0  ;;  %v1017_v52 = vadd.f32 %v974_v38, %v3130_v0 }
 0x10f   : > { %v2622_v40 = vpop.f32.mrf.mxu1  ;;  %v1199_v39 = vadd.f32 %v2635_v27, %v1016_v25 }
 0x110   : > { %v1160_v41 = vpop.f32.mrf.mxu0 }
 0x111   : > { %v977_v42 = vpop.f32.mrf.mxu1 }
 0x112   : > { %v3144_v43 = vpop.f32.mrf.mxu0  ;;  %v1198_v42 = vadd.f32 %v1143_v29, %v1015_v32  ;;  %v3182_v29 = vld [vmem:[%s3245_s2] ss:$0 sm:$0xff] }
 0x113   : > { %v3146_v44 = vpop.f32.mrf.mxu1 }
 0x114   : > { %v3148_v45 = vpop.f32.mrf.mxu0 }
 0x115   : > { %v3150_v46 = vpop.f32.mrf.mxu1 }
 0x116   : > { %v2644_v47 = vpop.f32.mrf.mxu0 }
 0x117   : > { %v2626_v49 = vpop.f32.mrf.mxu1 }
 0x118   : > { %v1174_v50 = vpop.f32.mrf.mxu0 }
 0x119   : > { %v991_v51 = vpop.f32.mrf.mxu1 }
 0x11a   : > { %v3152_v53 = vpop.f32.mrf.mxu0  ;;  %v1018_v51 = vadd.f32 %v2621_v36, %v3128_v60  ;;  %v1200_v36 = vadd.f32 %v3142_v37, %v1017_v52 }
 0x11b   : > { %v3154_v54 = vpop.f32.mrf.mxu1 }
 0x11c   : > { %v3156_v55 = vpop.f32.mrf.mxu0  ;;  %v1201_v27 = vadd.f32 %v3140_v35, %v1018_v51 }
 0x11d   : > { %v3158_v56 = vpop.f32.mrf.mxu1 }
 0x11e   : > { %v2648_v57 = vpop.f32.mrf.mxu0 }
 0x11f   : > { %v2630_v58 = vpop.f32.mrf.mxu1 }
 0x120   : > { %v1188_v59 = vpop.f32.mrf.mxu0 }
 0x121   : > { %v1005_v61 = vpop.f32.mrf.mxu1 }
 0x122   : > { %v2671_v62 = vpop.f32.mrf.mxu0 }
 0x123   : > { %v2653_v63 = vpop.f32.mrf.mxu1 }
 0x124   : > { %v1579_v1 = vpop.f32.mrf.mxu0  ;;  %v1453_v47 = vadd.f32 %v2653_v63, %v1199_v39 }
 0x125   : > { %v1397_v2 = vpop.f32.mrf.mxu1 }
 0x126   : > { %v2672_v3 = vpop.f32.mrf.mxu0  ;;  %v1452_v48 = vadd.f32 %v1397_v2, %v1198_v42  ;;  %v1635_v30 = vadd.f32 %v2671_v62, %v1453_v47  ;;  %v1020_v62 = vadd.f32 %v3146_v44, %v3132_v8  ;;  %v1022_v47 = vadd.f32 %v3154_v54, %v3136_v20 }
 0x127   : > { %v2654_v4 = vpop.f32.mrf.mxu1 }
 0x128   : > { %v1582_v5 = vpop.f32.mrf.mxu0  ;;  %v1634_v61 = vadd.f32 %v1579_v1, %v1452_v48  ;;  %v1205_v54 = vadd.f32 %v3152_v53, %v1022_v47 }
 0x129   : > { %v1400_v6 = vpop.f32.mrf.mxu1 }
 0x12a   : > { %v2675_v7 = vpop.f32.mrf.mxu0 }
 0x12b   : > { %v2657_v9 = vpop.f32.mrf.mxu1 }
 0x12c   : > { %v1593_v10 = vpop.f32.mrf.mxu0  ;;  %v1455_v63 = vadd.f32 %v2657_v9, %v1201_v27 }
 0x12d   : > { %v1411_v11 = vpop.f32.mrf.mxu1 }
 0x12e   : > { %v2676_v13 = vpop.f32.mrf.mxu0  ;;  %v1454_v35 = vadd.f32 %v1411_v11, %v1200_v36 }
 0x12f   : > { %v2658_v14 = vpop.f32.mrf.mxu1 }
 0x130   : > { %v1596_v15 = vpop.f32.mrf.mxu0  ;;  %v1019_v14 = vadd.f32 %v3150_v46, %v3134_v12  ;;  %v1636_v44 = vadd.f32 %v1593_v10, %v1454_v35 }
 0x131   : > { %v1414_v16 = vpop.f32.mrf.mxu1 }
 0x132   : > { %v3160_v17 = vpop.f32.mrf.mxu0  ;;  %v1637_v16 = vadd.f32 %v2675_v7, %v1455_v63  ;;  %v1202_v25 = vadd.f32 %v3148_v45, %v1019_v14 }
 0x133   : > { %v2661_v18 = vpop.f32.mrf.mxu1 }
 0x134   : > { %v3162_v19 = vpop.f32.mrf.mxu0 }
 0x135   : > { %v3164_v21 = vpop.f32.mrf.mxu1 }
 0x136   : > { %v2680_v22 = vpop.f32.mrf.mxu0  ;;  %v1456_v10 = vadd.f32 %v3164_v21, %v1202_v25 }
 0x137   : > { %v2662_v23 = vpop.f32.mrf.mxu1 }
 0x138   : > { %v1610_v26 = vpop.f32.mrf.mxu0  ;;  %v1203_v23 = vadd.f32 %v3144_v43, %v1020_v62 }
 0x139   : > { %v1428_v31 = vpop.f32.mrf.mxu1 }
 0x13a   : > { %v3168_v33 = vpop.f32.mrf.mxu0  ;;  %v1457_v31 = vadd.f32 %v2661_v18, %v1203_v23  ;;  %v1021_v18 = vadd.f32 %v3158_v56, %v3138_v24 }
 0x13b   : > { %v3170_v34 = vpop.f32.mrf.mxu1 }
 0x13c   : > { %v3172_v40 = vpop.f32.mrf.mxu0  ;;  %v1204_v24 = vadd.f32 %v3156_v55, %v1021_v18 }
 0x13d   : > { %v3174_v41 = vpop.f32.mrf.mxu1 }
 0x13e   : > { %v2684_v49 = vpop.f32.mrf.mxu0  ;;  %v1458_v63 = vadd.f32 %v3174_v41, %v1204_v24 }
 0x13f   : > { %v2666_v50 = vpop.f32.mrf.mxu1 }
 0x140   : > { %v1624_v28 = vpop.f32.mrf.mxu0 }
 0x141   : > { %v1442_v57 = vpop.f32.mrf.mxu1  ;;  %v1639_v28 = vadd.f32 %v3160_v17, %v1457_v31 }
 0x142   : > { %v2707_v58 = vpop.f32.mrf.mxu0 }
 0x143   : > { %v2689_v59 = vpop.f32.mrf.mxu1 }
 0x144   : > { %v1817_v3 = vadd.f32 %v2689_v59, %v1635_v30  ;;  %v2015_v4 = vpop.f32.mrf.mxu0  ;;  %v1638_v30 = vadd.f32 %v3162_v19, %v1456_v10 }
 0x145   : > { %v1761_v60 = vpop.f32.mrf.mxu1 }
 0x146   : > { %v2071_v2 = vadd.f32 %v2707_v58, %v1817_v3  ;;  %v1816_v0 = vadd.f32 %v1761_v60, %v1634_v61  ;;  %v2708_v38 = vpop.f32.mrf.mxu0  ;;  %v1459_v3 = vadd.f32 %v3170_v34, %v1205_v54 }
 0x147   : > { %v2690_v5 = vpop.f32.mrf.mxu1 }
 0x148   : > { %v2085_v1 = vadd.f32 %v3182_v29, %v2071_v2  ;;  %v2070_v6 = vadd.f32 %v2015_v4, %v1816_v0  ;;  %v2018_v13 = vpop.f32.mrf.mxu0  ;;  %v1641_v38 = vadd.f32 %v3168_v33, %v1459_v3 }
 0x149   : > { %v1764_v15 = vpop.f32.mrf.mxu1 }
 0x14a   : > { %v2093_v37 = vmax.f32 %v2085_v1, 0.0  ;;  %v2084_v9 = vadd.f32 %v3182_v29, %v2070_v6  ;;  %v2711_v22 = vpop.f32.mrf.mxu0  ;;  %v1640_v1 = vadd.f32 %v3172_v40, %v1458_v63 }
 0x14b   : > { %v2693_v8 = vpop.f32.mrf.mxu1 }
 0x14c   : > { %v2101_v11 = vpack.c.bf16 %v2093_v37, %v2093_v37  ;;  %v2092_v12 = vmax.f32 %v2084_v9, 0.0  ;;  %v1819_v46 = vadd.f32 %v2693_v8, %v1637_v16  ;;  %v2029_v7 = vpop.f32.mrf.mxu0 }
 0x14d   : > { %v1775_v26 = vpop.f32.mrf.mxu1 }
 0x14e   : > { %2110 = vst.msk [vmem:[%s3196_s20 + $0x4] sm:$0xf] %vm2108_vm3, %v2101_v11  ;;  %v2100_v43 = vpack.c.bf16 %v2092_v12, %v2092_v12  ;;  %v2073_v32 = vadd.f32 %v2711_v22, %v1819_v46  ;;  %v1818_v39 = vadd.f32 %v1775_v26, %v1636_v44  ;;  %v2712_v42 = vpop.f32.mrf.mxu0 }
 0x14f   : > { %v2694_v49 = vpop.f32.mrf.mxu1 }
 0x150   : > { %2109 = vst.msk [vmem:[%s3196_s20] sm:$0xf] %vm2108_vm3, %v2100_v43  ;;  %v2087_v50 = vadd.f32 %v3182_v29, %v2073_v32  ;;  %v2072_v51 = vadd.f32 %v2029_v7, %v1818_v39  ;;  %v2032_v45 = vpop.f32.mrf.mxu0 }
 0x151   : > { %v1778_v48 = vpop.f32.mrf.mxu1 }
 0x152   : > { %v2095_v57 = vmax.f32 %v2087_v50, 0.0  ;;  %v2086_v52 = vadd.f32 %v3182_v29, %v2072_v51  ;;  %v2715_v20 = vpop.f32.mrf.mxu0 }
 0x153   : > { %v2697_v21 = vpop.f32.mrf.mxu1 }
 0x154   : > { %v2103_v58 = vpack.c.bf16 %v2095_v57, %v2095_v57  ;;  %v2094_v59 = vmax.f32 %v2086_v52, 0.0  ;;  %v1821_v27 = vadd.f32 %v2697_v21, %v1639_v28  ;;  %v2043_v61 = vpop.f32.mrf.mxu0 }
 0x155   : > { %v1789_v56 = vpop.f32.mrf.mxu1 }
 0x156   : > { %2112 = vst.msk [vmem:[%s3196_s20 + $0xc] sm:$0xf] %vm2108_vm3, %v2103_v58  ;;  %v2102_v17 = vpack.c.bf16 %v2094_v59, %v2094_v59  ;;  %v2075_v4 = vadd.f32 %v2715_v20, %v1821_v27  ;;  %v1820_v60 = vadd.f32 %v1789_v56, %v1638_v30  ;;  %v2716_v36 = vpop.f32.mrf.mxu0 }
 0x157   : > { %v2698_v53 = vpop.f32.mrf.mxu1 }
 0x158   : > { %2111 = vst.msk [vmem:[%s3196_s20 + $0x8] sm:$0xf] %vm2108_vm3, %v2102_v17  ;;  %v2089_v19 = vadd.f32 %v3182_v29, %v2075_v4  ;;  %v2074_v2 = vadd.f32 %v2043_v61, %v1820_v60  ;;  %v2046_v0 = vpop.f32.mrf.mxu0 }
 0x159   : > { %v1792_v55 = vpop.f32.mrf.mxu1 }
 0x15a   : > { %v2097_v34 = vmax.f32 %v2089_v19, 0.0  ;;  %v2088_v62 = vadd.f32 %v3182_v29, %v2074_v2  ;;  %v2719_v5 = vpop.f32.mrf.mxu0 }
 0x15b   : > { %v2701_v35 = vpop.f32.mrf.mxu1 }
 0x15c   : > { %v2105_v6 = vpack.c.bf16 %v2097_v34, %v2097_v34  ;;  %v2096_v41 = vmax.f32 %v2088_v62, 0.0  ;;  %v1823_v13 = vadd.f32 %v2701_v35, %v1641_v38  ;;  %v2057_v14 = vpop.f32.mrf.mxu0 }
 0x15d   : > { %v1803_v15 = vpop.f32.mrf.mxu1 }
 0x15e   : > { %2114 = vst.msk [vmem:[%s3196_s20 + $0x14] sm:$0xf] %vm2108_vm3, %v2105_v6  ;;  %v2104_v16 = vpack.c.bf16 %v2096_v41, %v2096_v41  ;;  %v2077_v37 = vadd.f32 %v2719_v5, %v1823_v13  ;;  %v1822_v33 = vadd.f32 %v1803_v15, %v1640_v1  ;;  %v2720_v9 = vpop.f32.mrf.mxu0 }
 0x15f   : > { %v2702_v22 = vpop.f32.mrf.mxu1 }
 0x160   : > { %2113 = vst.msk [vmem:[%s3196_s20 + $0x10] sm:$0xf] %vm2108_vm3, %v2104_v16  ;;  %v2091_v23 = vadd.f32 %v3182_v29, %v2077_v37  ;;  %v2076_v8 = vadd.f32 %v2057_v14, %v1822_v33  ;;  %v2060_v40 = vpop.f32.mrf.mxu0 }
 0x161   : > { %v1806_v44 = vpop.f32.mrf.mxu1 }
 0x162   : > { %v2099_v11 = vmax.f32 %v2091_v23, 0.0  ;;  %v2090_v12 = vadd.f32 %v3182_v29, %v2076_v8 }
 0x164   : > { %v2107_v46 = vpack.c.bf16 %v2099_v11, %v2099_v11  ;;  %v2098_v7 = vmax.f32 %v2090_v12, 0.0 }
 0x166   : > { %2116 = vst.msk [vmem:[%s3196_s20 + $0x1c] sm:$0xf] %vm2108_vm3, %v2107_v46  ;;  %v2106_v25 = vpack.c.bf16 %v2098_v7, %v2098_v7 }
 0x168   : > { %2115 = vst.msk [vmem:[%s3196_s20 + $0x18] sm:$0xf] %vm2108_vm3, %v2106_v25 }
 0x169 PF: > { %s13_s14 = sadd.s32 1, %s2855_s14   ;;  %s3247_s12 = smov %s2851_s13 }
 0x16a   : > { %p10_p5 = scmp.ge.s32.totalorder %s13_s14, 4   ;;  %s3248_s13 = smov %s3250_s15 }
 0x16c   :  { %12 = sbr.rel (!%p10_p5) target bundleno = 2 (0x2), region = 79 }

</bundles_post_ra>
